<compile_context>
chip_gen: v7x
topology: tpu7x:2x2x1
jax: 0.10.0
libtpu: 0.0.40
codegen_flags: <defaults>
</compile_context>

<pallas_src>
import functools
import math

import jax
import jax.numpy as jnp
from jax.experimental import pallas as pl
from jax.experimental.pallas import tpu as pltpu


# ----------------------------- chip-aware knobs --------------------------------

def _device_kind():
    try:
        return jax.devices()[0].device_kind.lower()
    except Exception:
        return ""


def _tensorcores_per_chip():
    # v7x has 2 TensorCores per chip; v5e / v6e have 1.
    return 2 if "v7" in _device_kind() else 1


def _vmem_limit_bytes():
    # v7x: 64 MiB physical VMEM per TensorCore; v5e / v6e: 128 MiB. Leave headroom.
    phys = (64 if "v7" in _device_kind() else 128) * 1024 * 1024
    return min(int(phys * 0.85), 100 * 1024 * 1024)


def _num_batch_tiles(batch, seq_len):
    # Split the batch across TensorCores only on multi-TC chips (v7x), and only
    # when each half still has >= 256 rows so the 2x256 MXU stays fed.  On
    # single-TC v5e/v6e a split just doubles weight DMA and halves matmul M.
    if _tensorcores_per_chip() < 2:
        return 1
    rows_half = (batch // 2) * seq_len
    if batch % 2 == 0 and rows_half % 8 == 0 and rows_half >= 256:
        return 2
    return 1


# ----------------------------- in-kernel helpers -------------------------------

def _layernorm(x, w, b, eps=1e-5):
    # x: (R, C) f32, w/b: (1, C) f32 -- matches torch.nn.LayerNorm (biased var).
    mu = jnp.mean(x, axis=-1, keepdims=True)
    var = jnp.mean((x - mu) ** 2, axis=-1, keepdims=True)
    return (x - mu) * jax.lax.rsqrt(var + eps) * w + b


def _gelu_exact(x):
    # Exact (erf-based) GELU matching torch.nn.GELU(); erf via the
    # Abramowitz-Stegun 7.1.26 polynomial (|err| < 1.5e-7), built from exp +
    # basic VPU ops only so it lowers on all TPU generations.
    z = x * 0.7071067811865476              # x / sqrt(2)
    a = jnp.abs(z)
    t = 1.0 / (1.0 + 0.3275911 * a)
    poly = t * (0.254829592 + t * (-0.284496736 + t * (1.421413741
               + t * (-1.453152027 + t * 1.061405429))))
    erf_abs = 1.0 - poly * jnp.exp(-a * a)
    erf = jnp.where(z < 0, -erf_abs, erf_abs)
    return 0.5 * x * (1.0 + erf)


# ------------------------ fused transformer-stack kernel -----------------------

def transformer_stack_kernel(
    x_ref,
    ln1w_ref, ln1b_ref, qkvw_ref, qkvb_ref, outw_ref, outb_ref,
    ln2w_ref, ln2b_ref, ff1w_ref, ff1b_ref, ff2w_ref, ff2b_ref,
    o_ref, mask_ref,
    *, batch_tile, seq_len, num_heads, head_dim,
):
    layer = pl.program_id(1)
    Bt, T, H, Dh = batch_tile, seq_len, num_heads, head_dim

    @pl.when(layer == 0)
    def _():
        # Residual stream is accumulated directly in the (revisited) output
        # block; it stays resident in VMEM across the layer axis.
        o_ref[...] = x_ref[...].astype(jnp.float32)
        # Causal mask as a finite additive bias, built once per batch tile
        # (finite value avoids exp(-inf - -inf) = NaN pitfalls).
        row = jax.lax.broadcasted_iota(jnp.int32, (T, T), 0)
        col = jax.lax.broadcasted_iota(jnp.int32, (T, T), 1)
        mask_ref[...] = jnp.where(row >= col, 0.0, -1e30).astype(jnp.float32)

    x = o_ref[...]                                   # (R, C) f32, R = Bt * T
    R, C = x.shape

    # ---- attention branch: x + out_proj(MHA(ln1(x))) ----
    h = _layernorm(x, ln1w_ref[...], ln1b_ref[...])
    qkv = jnp.dot(h.astype(jnp.bfloat16), qkvw_ref[...],
                  preferred_element_type=jnp.float32) + qkvb_ref[...]
    # NOTE: 1/sqrt(head_dim) is already folded into the Q columns of qkv_w/b.
    q16 = qkv[:, 0 * C:1 * C].astype(jnp.bfloat16)
    k16 = qkv[:, 1 * C:2 * C].astype(jnp.bfloat16)
    v16 = qkv[:, 2 * C:3 * C].astype(jnp.bfloat16)

    bias = mask_ref[...]                             # (T, T), broadcasts over Bt
    head_out = []
    for hh in range(H):                              # static unroll over heads
        lo = hh * Dh
        qh = q16[:, lo:lo + Dh].reshape(Bt, T, Dh)
        kh = k16[:, lo:lo + Dh].reshape(Bt, T, Dh)
        vh = v16[:, lo:lo + Dh].reshape(Bt, T, Dh)
        # batched over Bt (single batch dim), contracting head_dim
        s = jnp.einsum("bqd,bkd->bqk", qh, kh,
                       preferred_element_type=jnp.float32) + bias
        s = s - jnp.max(s, axis=-1, keepdims=True)
        p = jnp.exp(s)                               # f32 softmax
        p = p * pl.reciprocal(jnp.sum(p, axis=-1, keepdims=True), approx=True)
        oh = jnp.einsum("bqk,bkd->bqd", p.astype(jnp.bfloat16), vh,
                        preferred_element_type=jnp.float32)
        head_out.append(oh.reshape(R, Dh))
    # ONE output projection with full contraction depth K=C (per review),
    # instead of H small K=head_dim matmuls + H f32 (R, C) accumulations.
    attn = jnp.concatenate(head_out, axis=-1)        # (R, C), head-major cols
    attn = jnp.dot(attn.astype(jnp.bfloat16), outw_ref[...],
                   preferred_element_type=jnp.float32) + outb_ref[...]
    x = x + attn

    # ---- MLP branch: x + ff2(gelu(ff1(ln2(x)))) ----
    h2 = _layernorm(x, ln2w_ref[...], ln2b_ref[...])
    f = jnp.dot(h2.astype(jnp.bfloat16), ff1w_ref[...],
                preferred_element_type=jnp.float32) + ff1b_ref[...]
    f = _gelu_exact(f)
    f = jnp.dot(f.astype(jnp.bfloat16), ff2w_ref[...],
                preferred_element_type=jnp.float32) + ff2b_ref[...]
    x = x + f

    o_ref[...] = x          # resident across the layer axis; HBM writeback once


def transformer_stack(x2d, stacked, *, batch, seq_len, num_heads):
    R, C = x2d.shape
    num_layers = stacked["qkv_w"].shape[0]
    head_dim = C // num_heads

    nbt = _num_batch_tiles(batch, seq_len)
    bt = batch // nbt
    rt = bt * seq_len

    weights = [stacked[k] for k in (
        "ln1_w", "ln1_b", "qkv_w", "qkv_b", "out_w", "out_b",
        "ln2_w", "ln2_b", "ff1_w", "ff1_b", "ff2_w", "ff2_b")]
    w_specs = [pl.BlockSpec((None,) + w.shape[1:], lambda i, l: (l, 0, 0))
               for w in weights]

    kernel = functools.partial(
        transformer_stack_kernel, batch_tile=bt, seq_len=seq_len,
        num_heads=num_heads, head_dim=head_dim)

    # TODO(synk): for very large C / ff_dim on v7x (64 MiB VMEM), split ff1/ff2
    # over ff_dim chunks (inner pltpu.emit_pipeline) instead of keeping a whole
    # layer's weights resident / double-buffered.
    return pl.pallas_call(
        kernel,
        out_shape=jax.ShapeDtypeStruct((R, C), jnp.float32),
        grid=(nbt, num_layers),
        in_specs=[pl.BlockSpec((rt, C), lambda i, l: (i, 0))] + w_specs,
        out_specs=pl.BlockSpec((rt, C), lambda i, l: (i, 0)),
        scratch_shapes=[pltpu.VMEM((seq_len, seq_len), jnp.float32)],
        input_output_aliases={0: 0},      # residual stream updated in place
        compiler_params=pltpu.CompilerParams(
            dimension_semantics=("parallel", "arbitrary"),
            vmem_limit_bytes=_vmem_limit_bytes()),
    )(x2d, *weights)


# ------------------------------ final LN + head ---------------------------------

def final_ln_head_kernel(x_ref, lnw_ref, lnb_ref, hw_ref, o_ref):
    x = x_ref[...].astype(jnp.float32)
    h = _layernorm(x, lnw_ref[...], lnb_ref[...])
    o_ref[...] = jnp.dot(h.astype(jnp.bfloat16), hw_ref[...],
                         preferred_element_type=jnp.float32).astype(o_ref.dtype)


def _pick_row_tile(r):
    for cand in (1024, 512, 256, 128):
        if r % cand == 0:
            return cand
    return r                                    # small inputs: one row block


def _pick_vocab_tile(vp, c, row_tile, vmem_budget):
    best, tile = 128, 128
    while tile <= vp:
        if vp % tile == 0:
            need = (2 * c * tile * 2            # head_w block (bf16, 2 buffers)
                    + 2 * row_tile * tile * 2   # out block (bf16, 2 buffers)
                    + 2 * row_tile * c * 4)     # x block (f32, 2 buffers)
            if need <= vmem_budget:
                best = tile
        tile += 128
    return best


def final_ln_head(x2d, ln_w, ln_b, head_w_padded):
    R, C = x2d.shape
    Vp = head_w_padded.shape[1]
    vmem_limit = _vmem_limit_bytes()
    rt = _pick_row_tile(R)
    vt = _pick_vocab_tile(Vp, C, rt, vmem_budget=vmem_limit // 2)
    return pl.pallas_call(
        final_ln_head_kernel,
        out_shape=jax.ShapeDtypeStruct((R, Vp), jnp.bfloat16),   # halve HBM store
        grid=(R // rt, Vp // vt),
        in_specs=[
            pl.BlockSpec((rt, C), lambda r, j: (r, 0)),
            pl.BlockSpec((1, C), lambda r, j: (0, 0)),
            pl.BlockSpec((1, C), lambda r, j: (0, 0)),
            pl.BlockSpec((C, vt), lambda r, j: (0, j)),
        ],
        out_specs=pl.BlockSpec((rt, vt), lambda r, j: (r, j)),
        compiler_params=pltpu.CompilerParams(
            dimension_semantics=("parallel", "parallel"),
            vmem_limit_bytes=vmem_limit),
    )(x2d, ln_w, ln_b, head_w_padded)


# ------------------------------ parameter setup ---------------------------------

def init_params(key, vocab_size, max_seq_len, embed_dim, num_heads, num_layers, ff_dim):
    keys = iter(jax.random.split(key, 8 * num_layers + 8))

    def normal(shape, scale=0.02):
        return (scale * jax.random.normal(next(keys), shape)).astype(jnp.float32)

    params = {
        "token_emb": normal((vocab_size, embed_dim)),
        "pos_emb": normal((max_seq_len, embed_dim)),
        "ln_f_w": jnp.ones((1, embed_dim), jnp.float32),
        "ln_f_b": jnp.zeros((1, embed_dim), jnp.float32),
        "head_w": normal((embed_dim, vocab_size)),   # (in, out), bias-free head
        "layers": [],
    }
    for _ in range(num_layers):
        params["layers"].append({
            "ln1_w": jnp.ones((1, embed_dim), jnp.float32),
            "ln1_b": jnp.zeros((1, embed_dim), jnp.float32),
            "qkv_w": normal((embed_dim, 3 * embed_dim)),
            "qkv_b": normal((1, 3 * embed_dim)),
            "out_w": normal((embed_dim, embed_dim)),
            "out_b": normal((1, embed_dim)),
            "ln2_w": jnp.ones((1, embed_dim), jnp.float32),
            "ln2_b": jnp.zeros((1, embed_dim), jnp.float32),
            "ff1_w": normal((embed_dim, ff_dim)),
            "ff1_b": normal((1, ff_dim)),
            "ff2_w": normal((ff_dim, embed_dim)),
            "ff2_b": normal((1, embed_dim)),
        })
    return params


def prepare_params(params, *, num_heads, lane=128):
    """Stack per-layer weights along L, fold the attention scale into Q,
    cast matmul weights to bf16, pad the vocab head to a lane-dense width."""
    layers = params["layers"]
    C = layers[0]["qkv_w"].shape[0]
    head_dim = C // num_heads
    scale = 1.0 / math.sqrt(head_dim)

    def stack(name):
        return jnp.stack([lp[name] for lp in layers], axis=0)

    qkv_w = stack("qkv_w")
    qkv_b = stack("qkv_b")
    # equivalence-preserving fold: (x @ Wq + bq) * s == x @ (s*Wq) + s*bq
    qkv_w = qkv_w.at[:, :, :C].multiply(scale)
    qkv_b = qkv_b.at[:, :, :C].multiply(scale)

    stacked = {
        "ln1_w": stack("ln1_w"), "ln1_b": stack("ln1_b"),
        "qkv_w": qkv_w.astype(jnp.bfloat16), "qkv_b": qkv_b,
        "out_w": stack("out_w").astype(jnp.bfloat16), "out_b": stack("out_b"),
        "ln2_w": stack("ln2_w"), "ln2_b": stack("ln2_b"),
        "ff1_w": stack("ff1_w").astype(jnp.bfloat16), "ff1_b": stack("ff1_b"),
        "ff2_w": stack("ff2_w").astype(jnp.bfloat16), "ff2_b": stack("ff2_b"),
    }

    head_w = params["head_w"]
    V = head_w.shape[1]
    Vp = ((V + lane - 1) // lane) * lane
    if Vp != V:
        head_w = jnp.pad(head_w, ((0, 0), (0, Vp - V)))  # zero cols, stripped later

    return {
        "token_emb": params["token_emb"],
        "pos_emb": params["pos_emb"],
        "ln_f_w": params["ln_f_w"],
        "ln_f_b": params["ln_f_b"],
        "head_w_padded": head_w.astype(jnp.bfloat16),
        "stacked": stacked,
    }


# --------------------------------- forward --------------------------------------

def gpt_simple_forward(idx, prepared, *, num_heads, vocab_size):
    B, T = idx.shape
    C = prepared["token_emb"].shape[1]
    # TODO(synk): fuse the embedding gather + pos add into layer 0 of the stack
    # (scalar-prefetch idx + pl.Element row gather) to avoid one (B*T, C) HBM
    # round-trip; kept as plain-JAX glue here.
    tok = jnp.take(prepared["token_emb"], idx, axis=0)          # (B, T, C)
    x = tok + prepared["pos_emb"][:T][None, :, :]
    x2d = x.reshape(B * T, C)

    x2d = transformer_stack(x2d, prepared["stacked"],
                            batch=B, seq_len=T, num_heads=num_heads)

    logits2d = final_ln_head(x2d, prepared["ln_f_w"], prepared["ln_f_b"],
                             prepared["head_w_padded"])
    Vp = prepared["head_w_padded"].shape[1]
    logits = logits2d.reshape(B, T, Vp)[:, :, :vocab_size]
    return logits.astype(jnp.float32)   # public dtype matches the torch module


# ----------------------------------- main ----------------------------------------

if __name__ == "__main__":
    vocab_size = 64
    max_seq_len = 16
    embed_dim = 32
    num_heads = 4
    num_layers = 2
    ff_dim = 64
    B, T = 2, 8

    key = jax.random.PRNGKey(0)
    pkey, ikey = jax.random.split(key)
    params = init_params(pkey, vocab_size, max_seq_len, embed_dim,
                         num_heads, num_layers, ff_dim)
    prepared = prepare_params(params, num_heads=num_heads)
    idx = jax.random.randint(ikey, (B, T), 0, vocab_size, dtype=jnp.int32)

    fwd = jax.jit(functools.partial(gpt_simple_forward,
                                    num_heads=num_heads, vocab_size=vocab_size))
    logits = fwd(idx, prepared)
    jax.block_until_ready(logits)
    assert logits.shape == (B, T, vocab_size)
    assert bool(jnp.all(jnp.isfinite(logits)))
    print("KERNEL_OK")
</pallas_src>

<mosaic_0001>
module attributes {stable_mosaic.version = 11 : i64} {
  func.func @final_ln_head_kernel(%arg0: i32, %arg1: i32, %arg2: memref<16x32xf32, #tpu.memory_space<vmem>>, %arg3: memref<1x32xf32, #tpu.memory_space<vmem>>, %arg4: memref<1x32xf32, #tpu.memory_space<vmem>>, %arg5: memref<32x128xbf16, #tpu.memory_space<vmem>>, %arg6: memref<16x128xbf16, #tpu.memory_space<vmem>>) attributes {dimension_semantics = [#tpu.dimension_semantics<parallel>, #tpu.dimension_semantics<parallel>], iteration_bounds = array<i64: 1, 1>, scalar_prefetch = 0 : i64, scratch_operands = 0 : i64, tpu.core_type = #tpu.core_type<tc>, window_params = [{transform_indices = @transform_0, window_bounds = array<i64: 16, 32>}, {pipeline_mode = #tpu.pipeline_mode<synchronous>, transform_indices = @transform_1, window_bounds = array<i64: 1, 32>}, {pipeline_mode = #tpu.pipeline_mode<synchronous>, transform_indices = @transform_2, window_bounds = array<i64: 1, 32>}, {transform_indices = @transform_3, window_bounds = array<i64: 32, 128>}, {transform_indices = @transform_4, window_bounds = array<i64: 16, 128>}]} {
    %c0 = arith.constant 0 : index
    %c0_0 = arith.constant 0 : index
    %0 = vector.load %arg2[%c0, %c0_0] : memref<16x32xf32, #tpu.memory_space<vmem>>, vector<16x32xf32>
    %c0_1 = arith.constant 0 : index
    %c0_2 = arith.constant 0 : index
    %1 = vector.load %arg3[%c0_1, %c0_2] : memref<1x32xf32, #tpu.memory_space<vmem>>, vector<1x32xf32>
    %c0_3 = arith.constant 0 : index
    %c0_4 = arith.constant 0 : index
    %2 = vector.load %arg4[%c0_3, %c0_4] : memref<1x32xf32, #tpu.memory_space<vmem>>, vector<1x32xf32>
    %cst = arith.constant dense<0.000000e+00> : vector<16xf32>
    %3 = vector.multi_reduction <add>, %0, %cst [1] : vector<16x32xf32> to vector<16xf32>
    %4 = vector.shape_cast %3 : vector<16xf32> to vector<16x1xf32>
    %cst_5 = arith.constant 3.200000e+01 : f32
    %5 = vector.broadcast %cst_5 : f32 to vector<16x1xf32>
    %6 = arith.divf %4, %5 : vector<16x1xf32>
    %7 = vector.broadcast %6 : vector<16x1xf32> to vector<16x32xf32>
    %8 = arith.subf %0, %7 : vector<16x32xf32>
    %9 = arith.mulf %8, %8 : vector<16x32xf32>
    %cst_6 = arith.constant dense<0.000000e+00> : vector<16xf32>
    %10 = vector.multi_reduction <add>, %9, %cst_6 [1] : vector<16x32xf32> to vector<16xf32>
    %11 = vector.shape_cast %10 : vector<16xf32> to vector<16x1xf32>
    %cst_7 = arith.constant 3.200000e+01 : f32
    %12 = vector.broadcast %cst_7 : f32 to vector<16x1xf32>
    %13 = arith.divf %11, %12 : vector<16x1xf32>
    %14 = vector.broadcast %6 : vector<16x1xf32> to vector<16x32xf32>
    %15 = arith.subf %0, %14 : vector<16x32xf32>
    %cst_8 = arith.constant 9.99999974E-6 : f32
    %16 = vector.broadcast %cst_8 : f32 to vector<16x1xf32>
    %17 = arith.addf %13, %16 : vector<16x1xf32>
    %18 = math.rsqrt %17 : vector<16x1xf32>
    %19 = vector.broadcast %18 : vector<16x1xf32> to vector<16x32xf32>
    %20 = arith.mulf %15, %19 : vector<16x32xf32>
    %21 = vector.broadcast %1 : vector<1x32xf32> to vector<16x32xf32>
    %22 = arith.mulf %20, %21 : vector<16x32xf32>
    %23 = vector.broadcast %2 : vector<1x32xf32> to vector<16x32xf32>
    %24 = arith.addf %22, %23 : vector<16x32xf32>
    %25 = arith.truncf %24 : vector<16x32xf32> to vector<16x32xbf16>
    %c0_9 = arith.constant 0 : index
    %c0_10 = arith.constant 0 : index
    %26 = vector.load %arg5[%c0_9, %c0_10] : memref<32x128xbf16, #tpu.memory_space<vmem>>, vector<32x128xbf16>
    %cst_11 = arith.constant dense<0.000000e+00> : vector<16x128xf32>
    %27 = tpu.matmul %25, %26, %cst_11 {dimension_numbers = #tpu.dot_dimension_numbers<[1], [0], [0], [1], [0, 0, 1, 1], [], []>} : vector<16x32xbf16>, vector<32x128xbf16>, vector<16x128xf32> -> vector<16x128xf32>
    %28 = arith.truncf %27 : vector<16x128xf32> to vector<16x128xbf16>
    %c0_12 = arith.constant 0 : index
    %c0_13 = arith.constant 0 : index
    %29 = vector.load %arg6[%c0_12, %c0_13] : memref<16x128xbf16, #tpu.memory_space<vmem>>, vector<16x128xbf16>
    tpu.vector_store %arg6[%c0_12, %c0_13], %28 {strides = array<i32>} : memref<16x128xbf16, #tpu.memory_space<vmem>>, vector<16x128xbf16>,
    return
  }
  func.func @transform_0(%arg0: i32, %arg1: i32) -> (i32, i32) {
    %c0_i32 = arith.constant 0 : i32
    %c0_i32_0 = arith.constant 0 : i32
    return %arg0, %c0_i32 : i32, i32
  }
  func.func @transform_1(%arg0: i32, %arg1: i32) -> (i32, i32) {
    %c0_i32 = arith.constant 0 : i32
    %c0_i32_0 = arith.constant 0 : i32
    %c0_i32_1 = arith.constant 0 : i32
    return %c0_i32, %c0_i32_0 : i32, i32
  }
  func.func @transform_2(%arg0: i32, %arg1: i32) -> (i32, i32) {
    %c0_i32 = arith.constant 0 : i32
    %c0_i32_0 = arith.constant 0 : i32
    %c0_i32_1 = arith.constant 0 : i32
    return %c0_i32, %c0_i32_0 : i32, i32
  }
  func.func @transform_3(%arg0: i32, %arg1: i32) -> (i32, i32) {
    %c0_i32 = arith.constant 0 : i32
    %c0_i32_0 = arith.constant 0 : i32
    return %c0_i32, %arg1 : i32, i32
  }
  func.func @transform_4(%arg0: i32, %arg1: i32) -> (i32, i32) {
    %c0_i32 = arith.constant 0 : i32
    return %arg0, %arg1 : i32, i32
  }
}

module attributes {stable_mosaic.version = 11 : i64} {
  func.func @transformer_stack_kernel(%arg0: i32, %arg1: i32, %arg2: memref<16x32xf32, #tpu.memory_space<vmem>>, %arg3: memref<1x1x32xf32, #tpu.memory_space<vmem>>, %arg4: memref<1x1x32xf32, #tpu.memory_space<vmem>>, %arg5: memref<1x32x96xbf16, #tpu.memory_space<vmem>>, %arg6: memref<1x1x96xf32, #tpu.memory_space<vmem>>, %arg7: memref<1x32x32xbf16, #tpu.memory_space<vmem>>, %arg8: memref<1x1x32xf32, #tpu.memory_space<vmem>>, %arg9: memref<1x1x32xf32, #tpu.memory_space<vmem>>, %arg10: memref<1x1x32xf32, #tpu.memory_space<vmem>>, %arg11: memref<1x32x64xbf16, #tpu.memory_space<vmem>>, %arg12: memref<1x1x64xf32, #tpu.memory_space<vmem>>, %arg13: memref<1x64x32xbf16, #tpu.memory_space<vmem>>, %arg14: memref<1x1x32xf32, #tpu.memory_space<vmem>>, %arg15: memref<16x32xf32, #tpu.memory_space<vmem>>, %arg16: memref<8x8xf32, #tpu.memory_space<vmem>>) attributes {dimension_semantics = [#tpu.dimension_semantics<parallel>, #tpu.dimension_semantics<arbitrary>], iteration_bounds = array<i64: 1, 2>, scalar_prefetch = 0 : i64, scratch_operands = 1 : i64, tpu.core_type = #tpu.core_type<tc>, window_params = [{transform_indices = @transform_0, window_bounds = array<i64: 16, 32>}, {transform_indices = @transform_1, window_bounds = array<i64: 1, 1, 32>}, {transform_indices = @transform_2, window_bounds = array<i64: 1, 1, 32>}, {transform_indices = @transform_3, window_bounds = array<i64: 1, 32, 96>}, {transform_indices = @transform_4, window_bounds = array<i64: 1, 1, 96>}, {transform_indices = @transform_5, window_bounds = array<i64: 1, 32, 32>}, {transform_indices = @transform_6, window_bounds = array<i64: 1, 1, 32>}, {transform_indices = @transform_7, window_bounds = array<i64: 1, 1, 32>}, {transform_indices = @transform_8, window_bounds = array<i64: 1, 1, 32>}, {transform_indices = @transform_9, window_bounds = array<i64: 1, 32, 64>}, {transform_indices = @transform_10, window_bounds = array<i64: 1, 1, 64>}, {transform_indices = @transform_11, window_bounds = array<i64: 1, 64, 32>}, {transform_indices = @transform_12, window_bounds = array<i64: 1, 1, 32>}, {transform_indices = @transform_13, window_bounds = array<i64: 16, 32>}]} {
    %c0_i32 = arith.constant 0 : i32
    %0 = arith.cmpi eq, %arg1, %c0_i32 : i32
    %1 = arith.extui %0 : i1 to i32
    %c0_i32_0 = arith.constant 0 : i32
    %2 = arith.cmpi ne, %1, %c0_i32_0 : i32
    scf.if %2 {
      %c0_86 = arith.constant 0 : index
      %c0_87 = arith.constant 0 : index
      %231 = vector.load %arg2[%c0_86, %c0_87] : memref<16x32xf32, #tpu.memory_space<vmem>>, vector<16x32xf32>
      %c0_88 = arith.constant 0 : index
      %c0_89 = arith.constant 0 : index
      %232 = vector.load %arg15[%c0_88, %c0_89] : memref<16x32xf32, #tpu.memory_space<vmem>>, vector<16x32xf32>
      tpu.vector_store %arg15[%c0_88, %c0_89], %231 {strides = array<i32>} : memref<16x32xf32, #tpu.memory_space<vmem>>, vector<16x32xf32>,
      %233 = tpu.iota {dimensions = array<i32: 0>} : vector<8x8xi32>
      %234 = tpu.iota {dimensions = array<i32: 1>} : vector<8x8xi32>
      %235 = arith.cmpi sge, %233, %234 : vector<8x8xi32>
      %cst_90 = arith.constant 0.000000e+00 : f32
      %cst_91 = arith.constant -1.000000e+30 : f32
      %236 = vector.broadcast %cst_90 : f32 to vector<8x8xf32>
      %237 = vector.broadcast %cst_91 : f32 to vector<8x8xf32>
      %238 = arith.select %235, %236, %237 : vector<8x8xi1>, vector<8x8xf32>
      %c0_92 = arith.constant 0 : index
      %c0_93 = arith.constant 0 : index
      %239 = vector.load %arg16[%c0_92, %c0_93] : memref<8x8xf32, #tpu.memory_space<vmem>>, vector<8x8xf32>
      tpu.vector_store %arg16[%c0_92, %c0_93], %238 {strides = array<i32>} : memref<8x8xf32, #tpu.memory_space<vmem>>, vector<8x8xf32>,
    } else {
    }
    %c0 = arith.constant 0 : index
    %c0_1 = arith.constant 0 : index
    %3 = vector.load %arg15[%c0, %c0_1] : memref<16x32xf32, #tpu.memory_space<vmem>>, vector<16x32xf32>
    %c0_2 = arith.constant 0 : index
    %c0_3 = arith.constant 0 : index
    %c0_4 = arith.constant 0 : index
    %4 = vector.load %arg3[%c0_2, %c0_3, %c0_4] : memref<1x1x32xf32, #tpu.memory_space<vmem>>, vector<1x1x32xf32>
    %5 = vector.shape_cast %4 : vector<1x1x32xf32> to vector<1x32xf32>
    %c0_5 = arith.constant 0 : index
    %c0_6 = arith.constant 0 : index
    %c0_7 = arith.constant 0 : index
    %6 = vector.load %arg4[%c0_5, %c0_6, %c0_7] : memref<1x1x32xf32, #tpu.memory_space<vmem>>, vector<1x1x32xf32>
    %7 = vector.shape_cast %6 : vector<1x1x32xf32> to vector<1x32xf32>
    %cst = arith.constant dense<0.000000e+00> : vector<16xf32>
    %8 = vector.multi_reduction <add>, %3, %cst [1] : vector<16x32xf32> to vector<16xf32>
    %9 = vector.shape_cast %8 : vector<16xf32> to vector<16x1xf32>
    %cst_8 = arith.constant 3.200000e+01 : f32
    %10 = vector.broadcast %cst_8 : f32 to vector<16x1xf32>
    %11 = arith.divf %9, %10 : vector<16x1xf32>
    %12 = vector.broadcast %11 : vector<16x1xf32> to vector<16x32xf32>
    %13 = arith.subf %3, %12 : vector<16x32xf32>
    %14 = arith.mulf %13, %13 : vector<16x32xf32>
    %cst_9 = arith.constant dense<0.000000e+00> : vector<16xf32>
    %15 = vector.multi_reduction <add>, %14, %cst_9 [1] : vector<16x32xf32> to vector<16xf32>
    %16 = vector.shape_cast %15 : vector<16xf32> to vector<16x1xf32>
    %cst_10 = arith.constant 3.200000e+01 : f32
    %17 = vector.broadcast %cst_10 : f32 to vector<16x1xf32>
    %18 = arith.divf %16, %17 : vector<16x1xf32>
    %19 = vector.broadcast %11 : vector<16x1xf32> to vector<16x32xf32>
    %20 = arith.subf %3, %19 : vector<16x32xf32>
    %cst_11 = arith.constant 9.99999974E-6 : f32
    %21 = vector.broadcast %cst_11 : f32 to vector<16x1xf32>
    %22 = arith.addf %18, %21 : vector<16x1xf32>
    %23 = math.rsqrt %22 : vector<16x1xf32>
    %24 = vector.broadcast %23 : vector<16x1xf32> to vector<16x32xf32>
    %25 = arith.mulf %20, %24 : vector<16x32xf32>
    %26 = vector.broadcast %5 : vector<1x32xf32> to vector<16x32xf32>
    %27 = arith.mulf %25, %26 : vector<16x32xf32>
    %28 = vector.broadcast %7 : vector<1x32xf32> to vector<16x32xf32>
    %29 = arith.addf %27, %28 : vector<16x32xf32>
    %30 = arith.truncf %29 : vector<16x32xf32> to vector<16x32xbf16>
    %c0_12 = arith.constant 0 : index
    %c0_13 = arith.constant 0 : index
    %c0_14 = arith.constant 0 : index
    %31 = vector.load %arg5[%c0_12, %c0_13, %c0_14] : memref<1x32x96xbf16, #tpu.memory_space<vmem>>, vector<1x32x96xbf16>
    %32 = vector.shape_cast %31 : vector<1x32x96xbf16> to vector<32x96xbf16>
    %cst_15 = arith.constant dense<0.000000e+00> : vector<16x96xf32>
    %33 = tpu.matmul %30, %32, %cst_15 {dimension_numbers = #tpu.dot_dimension_numbers<[1], [0], [0], [1], [0, 0, 1, 1], [], []>} : vector<16x32xbf16>, vector<32x96xbf16>, vector<16x96xf32> -> vector<16x96xf32>
    %c0_16 = arith.constant 0 : index
    %c0_17 = arith.constant 0 : index
    %c0_18 = arith.constant 0 : index
    %34 = vector.load %arg6[%c0_16, %c0_17, %c0_18] : memref<1x1x96xf32, #tpu.memory_space<vmem>>, vector<1x1x96xf32>
    %35 = vector.shape_cast %34 : vector<1x1x96xf32> to vector<1x96xf32>
    %36 = vector.broadcast %35 : vector<1x96xf32> to vector<16x96xf32>
    %37 = arith.addf %33, %36 : vector<16x96xf32>
    %38 = vector.extract_strided_slice %37 {offsets = [0, 0], sizes = [16, 32], strides = [1, 1]} : vector<16x96xf32> to vector<16x32xf32>
    %39 = arith.truncf %38 : vector<16x32xf32> to vector<16x32xbf16>
    %40 = vector.extract_strided_slice %37 {offsets = [0, 32], sizes = [16, 32], strides = [1, 1]} : vector<16x96xf32> to vector<16x32xf32>
    %41 = arith.truncf %40 : vector<16x32xf32> to vector<16x32xbf16>
    %42 = vector.extract_strided_slice %37 {offsets = [0, 64], sizes = [16, 32], strides = [1, 1]} : vector<16x96xf32> to vector<16x32xf32>
    %43 = arith.truncf %42 : vector<16x32xf32> to vector<16x32xbf16>
    %c0_19 = arith.constant 0 : index
    %c0_20 = arith.constant 0 : index
    %44 = vector.load %arg16[%c0_19, %c0_20] : memref<8x8xf32, #tpu.memory_space<vmem>>, vector<8x8xf32>
    %45 = vector.extract_strided_slice %39 {offsets = [0, 0], sizes = [16, 8], strides = [1, 1]} : vector<16x32xbf16> to vector<16x8xbf16>
    %46 = vector.shape_cast %45 : vector<16x8xbf16> to vector<2x8x8xbf16>
    %47 = vector.extract_strided_slice %41 {offsets = [0, 0], sizes = [16, 8], strides = [1, 1]} : vector<16x32xbf16> to vector<16x8xbf16>
    %48 = vector.shape_cast %47 : vector<16x8xbf16> to vector<2x8x8xbf16>
    %49 = vector.extract_strided_slice %43 {offsets = [0, 0], sizes = [16, 8], strides = [1, 1]} : vector<16x32xbf16> to vector<16x8xbf16>
    %50 = vector.shape_cast %49 : vector<16x8xbf16> to vector<2x8x8xbf16>
    "tpu.trace_start"() <{level = 10 : i32, message = "bqd,bkd->bqk"}> : () -> ()
    %cst_21 = arith.constant dense<0.000000e+00> : vector<2x8x8xf32>
    %51 = tpu.matmul %46, %48, %cst_21 {dimension_numbers = #tpu.dot_dimension_numbers<[2], [2], [1], [1], [0, 0, 0, 1, 1, 1], [0], [0]>} : vector<2x8x8xbf16>, vector<2x8x8xbf16>, vector<2x8x8xf32> -> vector<2x8x8xf32>
    "tpu.trace_stop"() : () -> ()
    %52 = vector.shape_cast %44 : vector<8x8xf32> to vector<1x8x8xf32>
    %53 = vector.broadcast %52 : vector<1x8x8xf32> to vector<2x8x8xf32>
    %54 = arith.addf %51, %53 : vector<2x8x8xf32>
    %cst_22 = arith.constant dense<0xFF800000> : vector<2x8xf32>
    %55 = vector.multi_reduction <maximumf>, %54, %cst_22 [2] : vector<2x8x8xf32> to vector<2x8xf32>
    %56 = vector.shape_cast %55 : vector<2x8xf32> to vector<2x8x1xf32>
    %57 = vector.broadcast %56 : vector<2x8x1xf32> to vector<2x8x8xf32>
    %58 = arith.subf %54, %57 : vector<2x8x8xf32>
    %59 = math.exp %58 : vector<2x8x8xf32>
    %cst_23 = arith.constant dense<0.000000e+00> : vector<2x8xf32>
    %60 = vector.multi_reduction <add>, %59, %cst_23 [2] : vector<2x8x8xf32> to vector<2x8xf32>
    %61 = vector.shape_cast %60 : vector<2x8xf32> to vector<2x8x1xf32>
    %62 = tpu.reciprocal %61 {approx = true} : vector<2x8x1xf32> -> vector<2x8x1xf32>
    %63 = vector.broadcast %62 : vector<2x8x1xf32> to vector<2x8x8xf32>
    %64 = arith.mulf %59, %63 : vector<2x8x8xf32>
    %65 = arith.truncf %64 : vector<2x8x8xf32> to vector<2x8x8xbf16>
    "tpu.trace_start"() <{level = 10 : i32, message = "bqk,bkd->bqd"}> : () -> ()
    %cst_24 = arith.constant dense<0.000000e+00> : vector<2x8x8xf32>
    %66 = tpu.matmul %65, %50, %cst_24 {dimension_numbers = #tpu.dot_dimension_numbers<[2], [1], [1], [2], [0, 0, 0, 1, 1, 2], [0], [0]>} : vector<2x8x8xbf16>, vector<2x8x8xbf16>, vector<2x8x8xf32> -> vector<2x8x8xf32>
    "tpu.trace_stop"() : () -> ()
    %67 = vector.shape_cast %66 : vector<2x8x8xf32> to vector<16x8xf32>
    %68 = vector.extract_strided_slice %39 {offsets = [0, 8], sizes = [16, 8], strides = [1, 1]} : vector<16x32xbf16> to vector<16x8xbf16>
    %69 = vector.shape_cast %68 : vector<16x8xbf16> to vector<2x8x8xbf16>
    %70 = vector.extract_strided_slice %41 {offsets = [0, 8], sizes = [16, 8], strides = [1, 1]} : vector<16x32xbf16> to vector<16x8xbf16>
    %71 = vector.shape_cast %70 : vector<16x8xbf16> to vector<2x8x8xbf16>
    %72 = vector.extract_strided_slice %43 {offsets = [0, 8], sizes = [16, 8], strides = [1, 1]} : vector<16x32xbf16> to vector<16x8xbf16>
    %73 = vector.shape_cast %72 : vector<16x8xbf16> to vector<2x8x8xbf16>
    "tpu.trace_start"() <{level = 10 : i32, message = "bqd,bkd->bqk"}> : () -> ()
    %cst_25 = arith.constant dense<0.000000e+00> : vector<2x8x8xf32>
    %74 = tpu.matmul %69, %71, %cst_25 {dimension_numbers = #tpu.dot_dimension_numbers<[2], [2], [1], [1], [0, 0, 0, 1, 1, 1], [0], [0]>} : vector<2x8x8xbf16>, vector<2x8x8xbf16>, vector<2x8x8xf32> -> vector<2x8x8xf32>
    "tpu.trace_stop"() : () -> ()
    %75 = vector.shape_cast %44 : vector<8x8xf32> to vector<1x8x8xf32>
    %76 = vector.broadcast %75 : vector<1x8x8xf32> to vector<2x8x8xf32>
    %77 = arith.addf %74, %76 : vector<2x8x8xf32>
    %cst_26 = arith.constant dense<0xFF800000> : vector<2x8xf32>
    %78 = vector.multi_reduction <maximumf>, %77, %cst_26 [2] : vector<2x8x8xf32> to vector<2x8xf32>
    %79 = vector.shape_cast %78 : vector<2x8xf32> to vector<2x8x1xf32>
    %80 = vector.broadcast %79 : vector<2x8x1xf32> to vector<2x8x8xf32>
    %81 = arith.subf %77, %80 : vector<2x8x8xf32>
    %82 = math.exp %81 : vector<2x8x8xf32>
    %cst_27 = arith.constant dense<0.000000e+00> : vector<2x8xf32>
    %83 = vector.multi_reduction <add>, %82, %cst_27 [2] : vector<2x8x8xf32> to vector<2x8xf32>
    %84 = vector.shape_cast %83 : vector<2x8xf32> to vector<2x8x1xf32>
    %85 = tpu.reciprocal %84 {approx = true} : vector<2x8x1xf32> -> vector<2x8x1xf32>
    %86 = vector.broadcast %85 : vector<2x8x1xf32> to vector<2x8x8xf32>
    %87 = arith.mulf %82, %86 : vector<2x8x8xf32>
    %88 = arith.truncf %87 : vector<2x8x8xf32> to vector<2x8x8xbf16>
    "tpu.trace_start"() <{level = 10 : i32, message = "bqk,bkd->bqd"}> : () -> ()
    %cst_28 = arith.constant dense<0.000000e+00> : vector<2x8x8xf32>
    %89 = tpu.matmul %88, %73, %cst_28 {dimension_numbers = #tpu.dot_dimension_numbers<[2], [1], [1], [2], [0, 0, 0, 1, 1, 2], [0], [0]>} : vector<2x8x8xbf16>, vector<2x8x8xbf16>, vector<2x8x8xf32> -> vector<2x8x8xf32>
    "tpu.trace_stop"() : () -> ()
    %90 = vector.shape_cast %89 : vector<2x8x8xf32> to vector<16x8xf32>
    %91 = vector.extract_strided_slice %39 {offsets = [0, 16], sizes = [16, 8], strides = [1, 1]} : vector<16x32xbf16> to vector<16x8xbf16>
    %92 = vector.shape_cast %91 : vector<16x8xbf16> to vector<2x8x8xbf16>
    %93 = vector.extract_strided_slice %41 {offsets = [0, 16], sizes = [16, 8], strides = [1, 1]} : vector<16x32xbf16> to vector<16x8xbf16>
    %94 = vector.shape_cast %93 : vector<16x8xbf16> to vector<2x8x8xbf16>
    %95 = vector.extract_strided_slice %43 {offsets = [0, 16], sizes = [16, 8], strides = [1, 1]} : vector<16x32xbf16> to vector<16x8xbf16>
    %96 = vector.shape_cast %95 : vector<16x8xbf16> to vector<2x8x8xbf16>
    "tpu.trace_start"() <{level = 10 : i32, message = "bqd,bkd->bqk"}> : () -> ()
    %cst_29 = arith.constant dense<0.000000e+00> : vector<2x8x8xf32>
    %97 = tpu.matmul %92, %94, %cst_29 {dimension_numbers = #tpu.dot_dimension_numbers<[2], [2], [1], [1], [0, 0, 0, 1, 1, 1], [0], [0]>} : vector<2x8x8xbf16>, vector<2x8x8xbf16>, vector<2x8x8xf32> -> vector<2x8x8xf32>
    "tpu.trace_stop"() : () -> ()
    %98 = vector.shape_cast %44 : vector<8x8xf32> to vector<1x8x8xf32>
    %99 = vector.broadcast %98 : vector<1x8x8xf32> to vector<2x8x8xf32>
    %100 = arith.addf %97, %99 : vector<2x8x8xf32>
    %cst_30 = arith.constant dense<0xFF800000> : vector<2x8xf32>
    %101 = vector.multi_reduction <maximumf>, %100, %cst_30 [2] : vector<2x8x8xf32> to vector<2x8xf32>
    %102 = vector.shape_cast %101 : vector<2x8xf32> to vector<2x8x1xf32>
    %103 = vector.broadcast %102 : vector<2x8x1xf32> to vector<2x8x8xf32>
    %104 = arith.subf %100, %103 : vector<2x8x8xf32>
    %105 = math.exp %104 : vector<2x8x8xf32>
    %cst_31 = arith.constant dense<0.000000e+00> : vector<2x8xf32>
    %106 = vector.multi_reduction <add>, %105, %cst_31 [2] : vector<2x8x8xf32> to vector<2x8xf32>
    %107 = vector.shape_cast %106 : vector<2x8xf32> to vector<2x8x1xf32>
    %108 = tpu.reciprocal %107 {approx = true} : vector<2x8x1xf32> -> vector<2x8x1xf32>
    %109 = vector.broadcast %108 : vector<2x8x1xf32> to vector<2x8x8xf32>
    %110 = arith.mulf %105, %109 : vector<2x8x8xf32>
    %111 = arith.truncf %110 : vector<2x8x8xf32> to vector<2x8x8xbf16>
    "tpu.trace_start"() <{level = 10 : i32, message = "bqk,bkd->bqd"}> : () -> ()
    %cst_32 = arith.constant dense<0.000000e+00> : vector<2x8x8xf32>
    %112 = tpu.matmul %111, %96, %cst_32 {dimension_numbers = #tpu.dot_dimension_numbers<[2], [1], [1], [2], [0, 0, 0, 1, 1, 2], [0], [0]>} : vector<2x8x8xbf16>, vector<2x8x8xbf16>, vector<2x8x8xf32> -> vector<2x8x8xf32>
    "tpu.trace_stop"() : () -> ()
    %113 = vector.shape_cast %112 : vector<2x8x8xf32> to vector<16x8xf32>
    %114 = vector.extract_strided_slice %39 {offsets = [0, 24], sizes = [16, 8], strides = [1, 1]} : vector<16x32xbf16> to vector<16x8xbf16>
    %115 = vector.shape_cast %114 : vector<16x8xbf16> to vector<2x8x8xbf16>
    %116 = vector.extract_strided_slice %41 {offsets = [0, 24], sizes = [16, 8], strides = [1, 1]} : vector<16x32xbf16> to vector<16x8xbf16>
    %117 = vector.shape_cast %116 : vector<16x8xbf16> to vector<2x8x8xbf16>
    %118 = vector.extract_strided_slice %43 {offsets = [0, 24], sizes = [16, 8], strides = [1, 1]} : vector<16x32xbf16> to vector<16x8xbf16>
    %119 = vector.shape_cast %118 : vector<16x8xbf16> to vector<2x8x8xbf16>
    "tpu.trace_start"() <{level = 10 : i32, message = "bqd,bkd->bqk"}> : () -> ()
    %cst_33 = arith.constant dense<0.000000e+00> : vector<2x8x8xf32>
    %120 = tpu.matmul %115, %117, %cst_33 {dimension_numbers = #tpu.dot_dimension_numbers<[2], [2], [1], [1], [0, 0, 0, 1, 1, 1], [0], [0]>} : vector<2x8x8xbf16>, vector<2x8x8xbf16>, vector<2x8x8xf32> -> vector<2x8x8xf32>
    "tpu.trace_stop"() : () -> ()
    %121 = vector.shape_cast %44 : vector<8x8xf32> to vector<1x8x8xf32>
    %122 = vector.broadcast %121 : vector<1x8x8xf32> to vector<2x8x8xf32>
    %123 = arith.addf %120, %122 : vector<2x8x8xf32>
    %cst_34 = arith.constant dense<0xFF800000> : vector<2x8xf32>
    %124 = vector.multi_reduction <maximumf>, %123, %cst_34 [2] : vector<2x8x8xf32> to vector<2x8xf32>
    %125 = vector.shape_cast %124 : vector<2x8xf32> to vector<2x8x1xf32>
    %126 = vector.broadcast %125 : vector<2x8x1xf32> to vector<2x8x8xf32>
    %127 = arith.subf %123, %126 : vector<2x8x8xf32>
    %128 = math.exp %127 : vector<2x8x8xf32>
    %cst_35 = arith.constant dense<0.000000e+00> : vector<2x8xf32>
    %129 = vector.multi_reduction <add>, %128, %cst_35 [2] : vector<2x8x8xf32> to vector<2x8xf32>
    %130 = vector.shape_cast %129 : vector<2x8xf32> to vector<2x8x1xf32>
    %131 = tpu.reciprocal %130 {approx = true} : vector<2x8x1xf32> -> vector<2x8x1xf32>
    %132 = vector.broadcast %131 : vector<2x8x1xf32> to vector<2x8x8xf32>
    %133 = arith.mulf %128, %132 : vector<2x8x8xf32>
    %134 = arith.truncf %133 : vector<2x8x8xf32> to vector<2x8x8xbf16>
    "tpu.trace_start"() <{level = 10 : i32, message = "bqk,bkd->bqd"}> : () -> ()
    %cst_36 = arith.constant dense<0.000000e+00> : vector<2x8x8xf32>
    %135 = tpu.matmul %134, %119, %cst_36 {dimension_numbers = #tpu.dot_dimension_numbers<[2], [1], [1], [2], [0, 0, 0, 1, 1, 2], [0], [0]>} : vector<2x8x8xbf16>, vector<2x8x8xbf16>, vector<2x8x8xf32> -> vector<2x8x8xf32>
    "tpu.trace_stop"() : () -> ()
    %136 = vector.shape_cast %135 : vector<2x8x8xf32> to vector<16x8xf32>
    %137 = tpu.concatenate %67, %90, %113, %136 in 1 : vector<16x8xf32>, vector<16x8xf32>, vector<16x8xf32>, vector<16x8xf32> -> vector<16x32xf32>
    %138 = arith.truncf %137 : vector<16x32xf32> to vector<16x32xbf16>
    %c0_37 = arith.constant 0 : index
    %c0_38 = arith.constant 0 : index
    %c0_39 = arith.constant 0 : index
    %139 = vector.load %arg7[%c0_37, %c0_38, %c0_39] : memref<1x32x32xbf16, #tpu.memory_space<vmem>>, vector<1x32x32xbf16>
    %140 = vector.shape_cast %139 : vector<1x32x32xbf16> to vector<32x32xbf16>
    %cst_40 = arith.constant dense<0.000000e+00> : vector<16x32xf32>
    %141 = tpu.matmul %138, %140, %cst_40 {dimension_numbers = #tpu.dot_dimension_numbers<[1], [0], [0], [1], [0, 0, 1, 1], [], []>} : vector<16x32xbf16>, vector<32x32xbf16>, vector<16x32xf32> -> vector<16x32xf32>
    %c0_41 = arith.constant 0 : index
    %c0_42 = arith.constant 0 : index
    %c0_43 = arith.constant 0 : index
    %142 = vector.load %arg8[%c0_41, %c0_42, %c0_43] : memref<1x1x32xf32, #tpu.memory_space<vmem>>, vector<1x1x32xf32>
    %143 = vector.shape_cast %142 : vector<1x1x32xf32> to vector<1x32xf32>
    %144 = vector.broadcast %143 : vector<1x32xf32> to vector<16x32xf32>
    %145 = arith.addf %141, %144 : vector<16x32xf32>
    %146 = arith.addf %3, %145 : vector<16x32xf32>
    %c0_44 = arith.constant 0 : index
    %c0_45 = arith.constant 0 : index
    %c0_46 = arith.constant 0 : index
    %147 = vector.load %arg9[%c0_44, %c0_45, %c0_46] : memref<1x1x32xf32, #tpu.memory_space<vmem>>, vector<1x1x32xf32>
    %148 = vector.shape_cast %147 : vector<1x1x32xf32> to vector<1x32xf32>
    %c0_47 = arith.constant 0 : index
    %c0_48 = arith.constant 0 : index
    %c0_49 = arith.constant 0 : index
    %149 = vector.load %arg10[%c0_47, %c0_48, %c0_49] : memref<1x1x32xf32, #tpu.memory_space<vmem>>, vector<1x1x32xf32>
    %150 = vector.shape_cast %149 : vector<1x1x32xf32> to vector<1x32xf32>
    %cst_50 = arith.constant dense<0.000000e+00> : vector<16xf32>
    %151 = vector.multi_reduction <add>, %146, %cst_50 [1] : vector<16x32xf32> to vector<16xf32>
    %152 = vector.shape_cast %151 : vector<16xf32> to vector<16x1xf32>
    %cst_51 = arith.constant 3.200000e+01 : f32
    %153 = vector.broadcast %cst_51 : f32 to vector<16x1xf32>
    %154 = arith.divf %152, %153 : vector<16x1xf32>
    %155 = vector.broadcast %154 : vector<16x1xf32> to vector<16x32xf32>
    %156 = arith.subf %146, %155 : vector<16x32xf32>
    %157 = arith.mulf %156, %156 : vector<16x32xf32>
    %cst_52 = arith.constant dense<0.000000e+00> : vector<16xf32>
    %158 = vector.multi_reduction <add>, %157, %cst_52 [1] : vector<16x32xf32> to vector<16xf32>
    %159 = vector.shape_cast %158 : vector<16xf32> to vector<16x1xf32>
    %cst_53 = arith.constant 3.200000e+01 : f32
    %160 = vector.broadcast %cst_53 : f32 to vector<16x1xf32>
    %161 = arith.divf %159, %160 : vector<16x1xf32>
    %162 = vector.broadcast %154 : vector<16x1xf32> to vector<16x32xf32>
    %163 = arith.subf %146, %162 : vector<16x32xf32>
    %cst_54 = arith.constant 9.99999974E-6 : f32
    %164 = vector.broadcast %cst_54 : f32 to vector<16x1xf32>
    %165 = arith.addf %161, %164 : vector<16x1xf32>
    %166 = math.rsqrt %165 : vector<16x1xf32>
    %167 = vector.broadcast %166 : vector<16x1xf32> to vector<16x32xf32>
    %168 = arith.mulf %163, %167 : vector<16x32xf32>
    %169 = vector.broadcast %148 : vector<1x32xf32> to vector<16x32xf32>
    %170 = arith.mulf %168, %169 : vector<16x32xf32>
    %171 = vector.broadcast %150 : vector<1x32xf32> to vector<16x32xf32>
    %172 = arith.addf %170, %171 : vector<16x32xf32>
    %173 = arith.truncf %172 : vector<16x32xf32> to vector<16x32xbf16>
    %c0_55 = arith.constant 0 : index
    %c0_56 = arith.constant 0 : index
    %c0_57 = arith.constant 0 : index
    %174 = vector.load %arg11[%c0_55, %c0_56, %c0_57] : memref<1x32x64xbf16, #tpu.memory_space<vmem>>, vector<1x32x64xbf16>
    %175 = vector.shape_cast %174 : vector<1x32x64xbf16> to vector<32x64xbf16>
    %cst_58 = arith.constant dense<0.000000e+00> : vector<16x64xf32>
    %176 = tpu.matmul %173, %175, %cst_58 {dimension_numbers = #tpu.dot_dimension_numbers<[1], [0], [0], [1], [0, 0, 1, 1], [], []>} : vector<16x32xbf16>, vector<32x64xbf16>, vector<16x64xf32> -> vector<16x64xf32>
    %c0_59 = arith.constant 0 : index
    %c0_60 = arith.constant 0 : index
    %c0_61 = arith.constant 0 : index
    %177 = vector.load %arg12[%c0_59, %c0_60, %c0_61] : memref<1x1x64xf32, #tpu.memory_space<vmem>>, vector<1x1x64xf32>
    %178 = vector.shape_cast %177 : vector<1x1x64xf32> to vector<1x64xf32>
    %179 = vector.broadcast %178 : vector<1x64xf32> to vector<16x64xf32>
    %180 = arith.addf %176, %179 : vector<16x64xf32>
    %cst_62 = arith.constant 0.707106769 : f32
    %181 = vector.broadcast %cst_62 : f32 to vector<16x64xf32>
    %182 = arith.mulf %180, %181 : vector<16x64xf32>
    %183 = math.absf %182 : vector<16x64xf32>
    %cst_63 = arith.constant 0.327591091 : f32
    %184 = vector.broadcast %cst_63 : f32 to vector<16x64xf32>
    %185 = arith.mulf %184, %183 : vector<16x64xf32>
    %cst_64 = arith.constant 1.000000e+00 : f32
    %186 = vector.broadcast %cst_64 : f32 to vector<16x64xf32>
    %187 = arith.addf %186, %185 : vector<16x64xf32>
    %cst_65 = arith.constant 1.000000e+00 : f32
    %188 = vector.broadcast %cst_65 : f32 to vector<16x64xf32>
    %189 = arith.divf %188, %187 : vector<16x64xf32>
    %cst_66 = arith.constant 1.06140542 : f32
    %190 = vector.broadcast %cst_66 : f32 to vector<16x64xf32>
    %191 = arith.mulf %189, %190 : vector<16x64xf32>
    %cst_67 = arith.constant -1.45315206 : f32
    %192 = vector.broadcast %cst_67 : f32 to vector<16x64xf32>
    %193 = arith.addf %192, %191 : vector<16x64xf32>
    %194 = arith.mulf %189, %193 : vector<16x64xf32>
    %cst_68 = arith.constant 1.42141378 : f32
    %195 = vector.broadcast %cst_68 : f32 to vector<16x64xf32>
    %196 = arith.addf %195, %194 : vector<16x64xf32>
    %197 = arith.mulf %189, %196 : vector<16x64xf32>
    %cst_69 = arith.constant -0.284496725 : f32
    %198 = vector.broadcast %cst_69 : f32 to vector<16x64xf32>
    %199 = arith.addf %198, %197 : vector<16x64xf32>
    %200 = arith.mulf %189, %199 : vector<16x64xf32>
    %cst_70 = arith.constant 0.254829586 : f32
    %201 = vector.broadcast %cst_70 : f32 to vector<16x64xf32>
    %202 = arith.addf %201, %200 : vector<16x64xf32>
    %203 = arith.mulf %189, %202 : vector<16x64xf32>
    %cst_71 = arith.constant 0.000000e+00 : f32
    %204 = vector.broadcast %cst_71 : f32 to vector<16x64xf32>
    %205 = arith.subf %204, %183 : vector<16x64xf32>
    %206 = arith.mulf %205, %183 : vector<16x64xf32>
    %207 = math.exp %206 : vector<16x64xf32>
    %208 = arith.mulf %203, %207 : vector<16x64xf32>
    %cst_72 = arith.constant 1.000000e+00 : f32
    %209 = vector.broadcast %cst_72 : f32 to vector<16x64xf32>
    %210 = arith.subf %209, %208 : vector<16x64xf32>
    %cst_73 = arith.constant 0.000000e+00 : f32
    %211 = vector.broadcast %cst_73 : f32 to vector<16x64xf32>
    %212 = arith.cmpf olt, %182, %211 : vector<16x64xf32>
    %cst_74 = arith.constant 0.000000e+00 : f32
    %213 = vector.broadcast %cst_74 : f32 to vector<16x64xf32>
    %214 = arith.subf %213, %210 : vector<16x64xf32>
    %215 = arith.select %212, %214, %210 : vector<16x64xi1>, vector<16x64xf32>
    %cst_75 = arith.constant 5.000000e-01 : f32
    %216 = vector.broadcast %cst_75 : f32 to vector<16x64xf32>
    %217 = arith.mulf %216, %180 : vector<16x64xf32>
    %cst_76 = arith.constant 1.000000e+00 : f32
    %218 = vector.broadcast %cst_76 : f32 to vector<16x64xf32>
    %219 = arith.addf %218, %215 : vector<16x64xf32>
    %220 = arith.mulf %217, %219 : vector<16x64xf32>
    %221 = arith.truncf %220 : vector<16x64xf32> to vector<16x64xbf16>
    %c0_77 = arith.constant 0 : index
    %c0_78 = arith.constant 0 : index
    %c0_79 = arith.constant 0 : index
    %222 = vector.load %arg13[%c0_77, %c0_78, %c0_79] : memref<1x64x32xbf16, #tpu.memory_space<vmem>>, vector<1x64x32xbf16>
    %223 = vector.shape_cast %222 : vector<1x64x32xbf16> to vector<64x32xbf16>
    %cst_80 = arith.constant dense<0.000000e+00> : vector<16x32xf32>
    %224 = tpu.matmul %221, %223, %cst_80 {dimension_numbers = #tpu.dot_dimension_numbers<[1], [0], [0], [1], [0, 0, 1, 1], [], []>} : vector<16x64xbf16>, vector<64x32xbf16>, vector<16x32xf32> -> vector<16x32xf32>
    %c0_81 = arith.constant 0 : index
    %c0_82 = arith.constant 0 : index
    %c0_83 = arith.constant 0 : index
    %225 = vector.load %arg14[%c0_81, %c0_82, %c0_83] : memref<1x1x32xf32, #tpu.memory_space<vmem>>, vector<1x1x32xf32>
    %226 = vector.shape_cast %225 : vector<1x1x32xf32> to vector<1x32xf32>
    %227 = vector.broadcast %226 : vector<1x32xf32> to vector<16x32xf32>
    %228 = arith.addf %224, %227 : vector<16x32xf32>
    %229 = arith.addf %146, %228 : vector<16x32xf32>
    %c0_84 = arith.constant 0 : index
    %c0_85 = arith.constant 0 : index
    %230 = vector.load %arg15[%c0_84, %c0_85] : memref<16x32xf32, #tpu.memory_space<vmem>>, vector<16x32xf32>
    tpu.vector_store %arg15[%c0_84, %c0_85], %229 {strides = array<i32>} : memref<16x32xf32, #tpu.memory_space<vmem>>, vector<16x32xf32>,
    return
  }
  func.func @transform_0(%arg0: i32, %arg1: i32) -> (i32, i32) {
    %c0_i32 = arith.constant 0 : i32
    %c0_i32_0 = arith.constant 0 : i32
    return %arg0, %c0_i32 : i32, i32
  }
  func.func @transform_1(%arg0: i32, %arg1: i32) -> (i32, i32, i32) {
    %c0_i32 = arith.constant 0 : i32
    %c0_i32_0 = arith.constant 0 : i32
    %c0_i32_1 = arith.constant 0 : i32
    return %arg1, %c0_i32, %c0_i32_0 : i32, i32, i32
  }
  func.func @transform_2(%arg0: i32, %arg1: i32) -> (i32, i32, i32) {
    %c0_i32 = arith.constant 0 : i32
    %c0_i32_0 = arith.constant 0 : i32
    %c0_i32_1 = arith.constant 0 : i32
    return %arg1, %c0_i32, %c0_i32_0 : i32, i32, i32
  }
  func.func @transform_3(%arg0: i32, %arg1: i32) -> (i32, i32, i32) {
    %c0_i32 = arith.constant 0 : i32
    %c0_i32_0 = arith.constant 0 : i32
    %c0_i32_1 = arith.constant 0 : i32
    return %arg1, %c0_i32, %c0_i32_0 : i32, i32, i32
  }
  func.func @transform_4(%arg0: i32, %arg1: i32) -> (i32, i32, i32) {
    %c0_i32 = arith.constant 0 : i32
    %c0_i32_0 = arith.constant 0 : i32
    %c0_i32_1 = arith.constant 0 : i32
    return %arg1, %c0_i32, %c0_i32_0 : i32, i32, i32
  }
  func.func @transform_5(%arg0: i32, %arg1: i32) -> (i32, i32, i32) {
    %c0_i32 = arith.constant 0 : i32
    %c0_i32_0 = arith.constant 0 : i32
    %c0_i32_1 = arith.constant 0 : i32
    return %arg1, %c0_i32, %c0_i32_0 : i32, i32, i32
  }
  func.func @transform_6(%arg0: i32, %arg1: i32) -> (i32, i32, i32) {
    %c0_i32 = arith.constant 0 : i32
    %c0_i32_0 = arith.constant 0 : i32
    %c0_i32_1 = arith.constant 0 : i32
    return %arg1, %c0_i32, %c0_i32_0 : i32, i32, i32
  }
  func.func @transform_7(%arg0: i32, %arg1: i32) -> (i32, i32, i32) {
    %c0_i32 = arith.constant 0 : i32
    %c0_i32_0 = arith.constant 0 : i32
    %c0_i32_1 = arith.constant 0 : i32
    return %arg1, %c0_i32, %c0_i32_0 : i32, i32, i32
  }
  func.func @transform_8(%arg0: i32, %arg1: i32) -> (i32, i32, i32) {
    %c0_i32 = arith.constant 0 : i32
    %c0_i32_0 = arith.constant 0 : i32
    %c0_i32_1 = arith.constant 0 : i32
    return %arg1, %c0_i32, %c0_i32_0 : i32, i32, i32
  }
  func.func @transform_9(%arg0: i32, %arg1: i32) -> (i32, i32, i32) {
    %c0_i32 = arith.constant 0 : i32
    %c0_i32_0 = arith.constant 0 : i32
    %c0_i32_1 = arith.constant 0 : i32
    return %arg1, %c0_i32, %c0_i32_0 : i32, i32, i32
  }
  func.func @transform_10(%arg0: i32, %arg1: i32) -> (i32, i32, i32) {
    %c0_i32 = arith.constant 0 : i32
    %c0_i32_0 = arith.constant 0 : i32
    %c0_i32_1 = arith.constant 0 : i32
    return %arg1, %c0_i32, %c0_i32_0 : i32, i32, i32
  }
  func.func @transform_11(%arg0: i32, %arg1: i32) -> (i32, i32, i32) {
    %c0_i32 = arith.constant 0 : i32
    %c0_i32_0 = arith.constant 0 : i32
    %c0_i32_1 = arith.constant 0 : i32
    return %arg1, %c0_i32, %c0_i32_0 : i32, i32, i32
  }
  func.func @transform_12(%arg0: i32, %arg1: i32) -> (i32, i32, i32) {
    %c0_i32 = arith.constant 0 : i32
    %c0_i32_0 = arith.constant 0 : i32
    %c0_i32_1 = arith.constant 0 : i32
    return %arg1, %c0_i32, %c0_i32_0 : i32, i32, i32
  }
  func.func @transform_13(%arg0: i32, %arg1: i32) -> (i32, i32) {
    %c0_i32 = arith.constant 0 : i32
    %c0_i32_0 = arith.constant 0 : i32
    return %arg0, %c0_i32 : i32, i32
  }
}

</mosaic_0001>

<bundles_post_ra>
// kernel: gpt_simple_forward.3
= control target key start
LH: loop header
LB: loop body
LE: loop exit
PB: predicated region body
PF: predicated region fallthrough
CT: control target
= control target key end

     0   :  { %9 = vsyncpa [#allocation3], 0  ;;  %s489_s0 = inlined_call_operand.hbm [shape: f32[16,32], index: 0, kind: input, shape index: {}]   ;;  %s490_s1 = inlined_call_operand.hbm [shape: f32[1,32], index: 1, kind: input, shape index: {}]   ;;  %s491_s2 = inlined_call_operand.hbm [shape: f32[1,32], index: 2, kind: input, shape index: {}]   ;;  %s492_s3 = inlined_call_operand.hbm [shape: bf16[32,128], index: 3, kind: input, shape index: {}]   ;;  %s493_s4 = inlined_call_operand.hbm [shape: bf16[16,128], index: 4, kind: output, shape index: {}]  }
   0x1   :  { %10 = vsyncpa [#allocation6], 0 }
   0x2   :  { %11 = vsyncpa [#allocation9], 0 }
   0x3   :  { %12 = vsyncpa [#allocation4], 0  ;;  %s368_s15 = smov [#allocation5]   ;;  %s369_s17 = smov [#allocation2]  }
   0x4   :  { %s31_s16 = sshll.u32 %s368_s15, 4  ;;  %s18_s18 = sshll.u32 %s369_s17, 4  ;;  %s32_s16 = int_to_ptr.vmem [resolvable:$true] %s31_s16  ;;  %s404_s18 = int_to_ptr.vmem [resolvable:$true] %s18_s18 }
   0x5   :  { %s250_s21 = scalar_lea.hbm %s490_s1, 16 }
   0x6   :  { %p251_p0 = scmp.ne.s32.totalorder %s490_s1, %s250_s21  ;;  %p254_p1 = scmp.lt.u32.totalorder %s250_s21, %s490_s1 }
   0x8   :  { %p256_p2 = pnand %p254_p1, %p251_p0 }
   0xa   :  { %259 = shalt.err (!%p256_p2)
}
   0xb   :  { %s260_s26 = scalar_lea.vmem %s32_s16, 16  ;;  %s264_s27 = scalar_lea.vmem %s32_s16, 32 }
   0xc   :  { %p261_p3 = scmp.ne.s32.totalorder %s32_s16, %s260_s26  ;;  %p265_p4 = scmp.lt.s32.totalorder %s32_s16, %s32_s16 }
   0xd   :  { %p266_p5 = scmp.lt.s32.totalorder %s264_s27, %s260_s26 }
   0xf   :  { %p267_p6 = por %p266_p5, %p265_p4 }
  0x11   :  { %p268_p7 = pnand %p267_p6, %p261_p3 }
  0x13   :  { %271 = shalt.err (!%p268_p7)
}
  0x14   :  { %34 = dma.hbm_to_vmem [thread:$0]  %s490_s1, 16, %s32_s16, [#allocation6]  }
  0x15   :  { %s272_s6 = scalar_lea.hbm %s489_s0, 256 }
  0x16   :  { %p273_p8 = scmp.ne.s32.totalorder %s489_s0, %s272_s6  ;;  %p276_p9 = scmp.lt.u32.totalorder %s272_s6, %s489_s0 }
  0x18   :  { %p278_p10 = pnand %p276_p9, %p273_p8 }
  0x1a   :  { %281 = shalt.err (!%p278_p10)
}
  0x1b   :  { %s282_s11 = scalar_lea.vmem %s404_s18, 256  ;;  %p287_p12 = scmp.lt.s32.totalorder %s404_s18, %s404_s18 }
  0x1c   :  { %p283_p11 = scmp.ne.s32.totalorder %s404_s18, %s282_s11  ;;  %p288_p13 = scmp.lt.s32.totalorder %s282_s11, %s282_s11 }
  0x1e   :  { %p289_p0 = por %p288_p13, %p287_p12 }
  0x20   :  { %p290_p1 = pnand %p289_p0, %p283_p11 }
  0x22   :  { %293 = shalt.err (!%p290_p1)
}
  0x23   :  { %s370_s1 = smov 128   ;;  %s371_s12 = smov 8  }
  0x24   :  { %24 = dma.hbm_to_vmem [thread:$0]  %s489_s0, 256, %s404_s18, [#allocation3], %s370_s1, %s370_s1, %s371_s12  }
  0x25   :  { %s372_s15 = smov [#allocation7]   ;;  %s373_s17 = smov [#allocation8]  }
  0x26   :  { %s41_s16 = sshll.u32 %s372_s15, 4  ;;  %s50_s19 = sshll.u32 %s373_s17, 4  ;;  %s42_s16 = int_to_ptr.vmem [resolvable:$true] %s41_s16  ;;  %s435_s19 = int_to_ptr.vmem [resolvable:$true] %s50_s19 }
  0x27   :  { %s294_s22 = scalar_lea.hbm %s491_s2, 16 }
  0x28   :  { %p295_p2 = scmp.ne.s32.totalorder %s491_s2, %s294_s22  ;;  %p298_p3 = scmp.lt.u32.totalorder %s294_s22, %s491_s2 }
  0x2a   :  { %p300_p4 = pnand %p298_p3, %p295_p2 }
  0x2c   :  { %303 = shalt.err (!%p300_p4)
}
  0x2d   :  { %s304_s0 = scalar_lea.vmem %s42_s16, 16  ;;  %s308_s18 = scalar_lea.vmem %s42_s16, 32 }
  0x2e   :  { %p305_p5 = scmp.ne.s32.totalorder %s42_s16, %s304_s0  ;;  %p309_p6 = scmp.lt.s32.totalorder %s42_s16, %s42_s16 }
  0x2f   :  { %p310_p7 = scmp.lt.s32.totalorder %s308_s18, %s304_s0 }
  0x31   :  { %p311_p8 = por %p310_p7, %p309_p6 }
  0x33   :  { %p312_p9 = pnand %p311_p8, %p305_p5 }
  0x35   :  { %315 = shalt.err (!%p312_p9)
}
  0x36   :  { %44 = dma.hbm_to_vmem [thread:$0]  %s491_s2, 16, %s42_s16, [#allocation6]  }
  0x37   :  { %s316_s5 = scalar_lea.hbm %s492_s3, 256 }
  0x38   :  { %p317_p10 = scmp.ne.s32.totalorder %s492_s3, %s316_s5  ;;  %p320_p11 = scmp.lt.u32.totalorder %s316_s5, %s492_s3 }
  0x3a   :  { %p322_p12 = pnand %p320_p11, %p317_p10 }
  0x3c   :  { %325 = shalt.err (!%p322_p12)
}
  0x3d   :  { %s326_s10 = scalar_lea.vmem %s435_s19, 256  ;;  %p331_p0 = scmp.lt.s32.totalorder %s435_s19, %s435_s19 }
  0x3e   :  { %p327_p13 = scmp.ne.s32.totalorder %s435_s19, %s326_s10  ;;  %p332_p1 = scmp.lt.s32.totalorder %s326_s10, %s326_s10 }
  0x40   :  { %p333_p2 = por %p332_p1, %p331_p0 }
  0x42   :  { %p334_p3 = pnand %p333_p2, %p327_p13 }
  0x44   :  { %337 = shalt.err (!%p334_p3)
}
  0x45   :  { %s374_s2 = smov 64   ;;  %s375_s11 = smov 4  }
  0x46   :  { %56 = dma.hbm_to_vmem [thread:$0]  %s492_s3, 256, %s435_s19, [#allocation9], %s374_s2, %s374_s2, %s375_s11  }
  0x47   :  { %360 = dma.done.wait [#allocation3], 256  }
  0x48   :  { %361 = vsyncadd [#allocation3], 4294967040 }
  0x49   :  { %362 = dma.done.wait [#allocation6], 32  }
  0x4a   :  { %363 = vsyncadd [#allocation6], 4294967264 }
  0x4b   :  { %364 = dma.done.wait [#allocation9], 256  }
  0x4c   :  { %365 = vsyncadd [#allocation9], 4294967040  ;;  %vm74_vm0 = vcmask 261120   ;;  %v70_v0 = vld [vmem:[#allocation2] sm:$0xff]  ;;  %v71_v1 = vld [vmem:[#allocation2 + $0x8] sm:$0xff]  ;;  %v376_v15 = vmov 0.0  }
  0x4d   :  { %v75_v2 = vsel %vm74_vm0, %v70_v0, 0.0  ;;  %v78_v3 = vsel %vm74_vm0, %v71_v1, 0.0  ;;  %v244_v14 = vld [vmem:[#allocation8] sm:$0xff]   ;;  %225 = vmatprep.subr.bf16.mxu0 %v376_v15  ;;  %v245_v16 = vld [vmem:[#allocation8 + $0x8] sm:$0xff]   ;;  %vm377_vm1 = vmmov 0   ;;  %s378_s3 = smov [#allocation10]  }
  0x4e   :  { %76 = vadd.xlane.f32.xlu0 %v75_v2  ;;  %226 = vmatpush3.bf16.msra.mxu0 %v244_v14  ;;  %v208_v25 = vld [vmem:[#allocation5] ss:$0 sm:$0xff]  ;;  %v209_v29 = vld [vmem:[#allocation7] ss:$0 sm:$0xff]  ;;  %s194_s13 = sshll.u32 %s378_s3, 4  ;;  %s195_s13 = int_to_ptr.vmem [resolvable:$true] %s194_s13 }
  0x4f   :  { %229 = vmatprep.mubr.msk.bf16.mxu0 %vm377_vm1, %v376_v15  ;;  %227 = vmatprep.subr.bf16.mxu0 %v376_v15  ;;  %s338_s14 = scalar_lea.vmem %s195_s13, 128  ;;  %p343_p5 = scmp.lt.s32.totalorder %s195_s13, %s195_s13 }
  0x50   :  { %p339_p4 = scmp.ne.s32.totalorder %s195_s13, %s338_s14  ;;  %p344_p6 = scmp.lt.s32.totalorder %s338_s14, %s338_s14 }
  0x52   :  { %79 = vadd.xlane.f32.xlu0 %v78_v3  ;;  %228 = vmatpush3.bf16.msra.mxu0 %v245_v16  ;;  %p345_p7 = por %p344_p6, %p343_p5 }
  0x54   :  { %p346_p8 = pnand %p345_p7, %p339_p4 }
  0xdb   :  { %v77_v4 = vpop.xlane.xlu0 %76 }
  0xdc   :  { %v82_v5 = vmul.f32 0.03125, %v77_v4 }
  0xde   :  { %v84_v6 = vsub.f32 %v70_v0, %v82_v5 }
  0xdf   :  { %v80_v7 = vpop.xlane.xlu0 %79 }
  0xe0   :  { %v83_v8 = vmul.f32 0.03125, %v80_v7  ;;  %v86_v9 = vmul.f32 %v84_v6, %v84_v6 }
  0xe2   :  { %v85_v10 = vsub.f32 %v71_v1, %v83_v8  ;;  %v88_v11 = vsel %vm74_vm0, %v86_v9, 0.0 }
  0xe3   :  { %89 = vadd.xlane.f32.xlu1 %v88_v11 }
  0xe4   :  { %v87_v12 = vmul.f32 %v85_v10, %v85_v10 }
  0xe6   :  { %v91_v13 = vsel %vm74_vm0, %v87_v12, 0.0 }
  0xe7   :  { %92 = vadd.xlane.f32.xlu1 %v91_v13 }
 0x170   :  { %v90_v17 = vpop.xlane.xlu1 %89 }
 0x171   :  { %v94_v18 = vmul.f32 0.03125, %v90_v17 }
 0x173   :  { %v96_v19 = vadd.f32 1e-05, %v94_v18 }
 0x174   :  { %v93_v20 = vpop.xlane.xlu1 %92 }
 0x175   :  { %246 = vrsqrt.f32 %v96_v19  ;;  %v95_v21 = vmul.f32 0.03125, %v93_v20 }
 0x177   :  { %v97_v22 = vadd.f32 1e-05, %v95_v21 }
 0x179   :  { %248 = vrsqrt.f32 %v97_v22 }
 0x17f   :  { %v247_v23 = vpop.eup %246 }
 0x180   :  { %v100_v24 = vmul.f32 %v247_v23, %v84_v6 }
 0x182   :  { %v108_v28 = vmul.f32 %v208_v25, %v100_v24 }
 0x183   :  { %v249_v26 = vpop.eup %248 }
 0x184   :  { %v101_v27 = vmul.f32 %v249_v26, %v85_v10  ;;  %v116_v31 = vadd.f32 %v209_v29, %v108_v28 }
 0x186   :  { %v109_v30 = vmul.f32 %v208_v25, %v101_v27 }
 0x188   :  { %v117_v32 = vadd.f32 %v209_v29, %v109_v30 }
 0x18a   :  { %v118_v33 = vpack.c.bf16 %v117_v32, %v116_v31 }
 0x18c   :  { %230 = vmatmul.mubr.msk.bf16.vlgmr.msra.gmra.mrb[0].mxu0 %vm74_vm0, %v118_v33 }
 0x25f   :  { %v172_v34 = vpop.f32.mrb[0].mxu0 }
 0x260   :  { %v231_v35 = vpop.f32.mrb[1].mxu0 }
 0x261   :  { %v175_v36 = vpop.f32.mrb[2].mxu0 }
 0x262   :  { %v220_v37 = vpack.c.bf16 %v175_v36, %v172_v34  ;;  %v232_v38 = vpop.f32.mrb[3].mxu0 }
 0x264   :  { %221 = vst [vmem:[#allocation10] sm:$0xff] %v220_v37  }
 0x265   :  { %349 = shalt.err (!%p346_p8)
}
 0x266   :  { %s350_s17 = scalar_lea.hbm %s493_s4, 128 }
 0x267   :  { %p351_p9 = scmp.ne.s32.totalorder %s493_s4, %s350_s17  ;;  %p354_p10 = scmp.lt.u32.totalorder %s350_s17, %s493_s4 }
 0x269   :  { %p356_p11 = pnand %p354_p10, %p351_p9 }
 0x26b   :  { %359 = shalt.err (!%p356_p11)
}
 0x26c   :  { %200 = dma.vmem_to_hbm [thread:$0]  %s195_s13, 128, %s493_s4, [#allocation4], %s374_s2, %s374_s2, %s375_s11  }
 0x26d   :  { %366 = dma.done.wait [#allocation4], 128  }
 0x26e   :  { %367 = vsyncadd [#allocation4], 4294967168 }
 0x26f   :  { %204 = vsyncpa [#allocation3], 1 }
 0x270   :  { %205 = vsyncpa [#allocation6], 1 }
 0x271   :  { %206 = vsyncpa [#allocation9], 1 }
 0x272   :  { %207 = vsyncpa [#allocation4], 1 }

// kernel: gpt_simple_forward.2
= control target key start
LH: loop header
LB: loop body
LE: loop exit
PB: predicated region body
PF: predicated region fallthrough
CT: control target
= control target key end

     0   :  { %s4434_s0 = inlined_call_operand.hbm [shape: f32[16,32], index: 0, kind: input, shape index: {}, may-alias: {0,13}]   ;;  %s4435_s1 = inlined_call_operand.hbm [shape: f32[2,1,32], index: 1, kind: input, shape index: {}]   ;;  %s4436_s2 = inlined_call_operand.hbm [shape: f32[2,1,32], index: 2, kind: input, shape index: {}]   ;;  %s4437_s3 = inlined_call_operand.hbm [shape: bf16[2,32,96], index: 3, kind: input, shape index: {}]   ;;  %s4438_s4 = inlined_call_operand.hbm [shape: f32[2,1,96], index: 4, kind: input, shape index: {}]   ;;  %s4439_s5 = inlined_call_operand.hbm [shape: bf16[2,32,32], index: 5, kind: input, shape index: {}]   ;;  %s4440_s6 = inlined_call_operand.hbm [shape: f32[2,1,32], index: 6, kind: input, shape index: {}]   ;;  %s4441_s7 = inlined_call_operand.hbm [shape: f32[2,1,32], index: 7, kind: input, shape index: {}]   ;;  %s4442_s8 = inlined_call_operand.hbm [shape: f32[2,1,32], index: 8, kind: input, shape index: {}]   ;;  %s4443_s9 = inlined_call_operand.hbm [shape: bf16[2,32,64], index: 9, kind: input, shape index: {}]   ;;  %s4444_s10 = inlined_call_operand.hbm [shape: f32[2,1,64], index: 10, kind: input, shape index: {}]   ;;  %s4445_s11 = inlined_call_operand.hbm [shape: bf16[2,64,32], index: 11, kind: input, shape index: {}]   ;;  %s4446_s12 = inlined_call_operand.hbm [shape: f32[2,1,32], index: 12, kind: input, shape index: {}]   ;;  %s4447_s13 = inlined_call_operand.hbm [shape: f32[16,32], index: 13, kind: output, shape index: {}, may-alias: {0,13}]  }
   0x1   :  { %4469 = sst [smem:[#allocation37_spill]] %s4434_s0 }
   0x2   :  { %4470 = sst [smem:[#allocation38_spill]] %s4435_s1 }
   0x3   :  { %4471 = sst [smem:[#allocation39_spill]] %s4437_s3 }
   0x4   :  { %4472 = sst [smem:[#allocation40_spill]] %s4439_s5 }
   0x5   :  { %4473 = sst [smem:[#allocation41_spill]] %s4441_s7 }
   0x6   :  { %4474 = sst [smem:[#allocation42_spill]] %s4442_s8 }
   0x7   :  { %4475 = sst [smem:[#allocation43_spill]] %s4444_s10 }
   0x8   :  { %4476 = sst [smem:[#allocation44_spill]] %s4446_s12 }
   0x9   :  { %4477 = sst [smem:[#allocation45_spill]] %s4447_s13 }
   0xa   :  { %18 = vsyncpa [#allocation4], 0 }
   0xb   :  { %19 = vsyncpa [#allocation7], 0 }
   0xc   :  { %21 = vsyncpa [#allocation7 + $0x1], 0 }
   0xd   :  { %22 = vsyncpa [#allocation10], 0 }
   0xe   :  { %24 = vsyncpa [#allocation10 + $0x1], 0 }
   0xf   :  { %25 = vsyncpa [#allocation13], 0 }
  0x10   :  { %27 = vsyncpa [#allocation13 + $0x1], 0 }
  0x11   :  { %28 = vsyncpa [#allocation16], 0 }
  0x12   :  { %30 = vsyncpa [#allocation16 + $0x1], 0 }
  0x13   :  { %31 = vsyncpa [#allocation19], 0 }
  0x14   :  { %33 = vsyncpa [#allocation19 + $0x1], 0 }
  0x15   :  { %34 = vsyncpa [#allocation22], 0 }
  0x16   :  { %36 = vsyncpa [#allocation22 + $0x1], 0 }
  0x17   :  { %37 = vsyncpa [#allocation5], 0  ;;  %s3619_s25 = smov 0   ;;  %s3621_s26 = smov 0  }
  0x18   :  { %s3623_s27 = smov 0   ;;  %s3625_s28 = smov 0  }
  0x19   :  { %s3627_s29 = smov 0   ;;  %s3629_s30 = smov 0  }
  0x1a LB: > { %4478 = sst [smem:[#allocation33_spill]] %s3499_s27  ;;  %s52_s14 = sadd.s32 1, %s3507_s29  ;;  %s3511_s30 = sphi %s3629_s30, %s43_s30   ;;  %s3507_s29 = sphi %s3627_s29, %s4526_s29   ;;  %s3503_s28 = sphi %s3625_s28, %s4525_s28   ;;  %s3499_s27 = sphi %s3623_s27, %s4521_s27   ;;  %s3495_s26 = sphi %s3621_s26, %s4524_s26   ;;  %s3491_s25 = sphi %s3619_s25, %s4523_s25  }
  0x1b   : > { %4479 = sst [smem:[#allocation34_spill]] %s3503_s28  ;;  %s88_s15 = sadd.s32 1, %s3499_s27 }
  0x1c   : > { %p53_p0 = scmp.ge.s32.totalorder %s52_s14, 2  ;;  %p95_p1 = scmp.ne.s32.totalorder %s3499_s27, %s3495_s26 }
  0x1d   : > { %p96_p2 = scmp.eq.s32.totalorder %s3511_s30, 0  ;;  %p2870_p4 = scmp.lt.s32.totalorder %s3511_s30, 2 }
  0x1e   : > { %s4528_s14 = smov (%p53_p0, %s52_s14), 0  ;;  %s3660_s17 = sand.u32 1, %s3511_s30  }
  0x1f   : > { %4480 = sst [smem:[#allocation35_spill]] %s4528_s14  ;;  %p97_p3 = por %p96_p2, %p95_p1 }
  0x20   : > { %s85_s16 = ssub.s32 %s3507_s29, %s4528_s14  ;;  %s3663_s18 = sand.u32 1, %s3499_s27  }
  0x21   : > { %p86_p5 = scmp.eq.s32.totalorder %s85_s16, 0  ;;  %s3666_s19 = sshll.u32 %s3507_s29, 4 }
  0x22   : > { %s4482_s1 = sld [smem:[#allocation38_spill]]  ;;  %s456_s24 = scalar_lea.vmem [#allocation6], %s3663_s18 }
  0x23   : > { %s3669_s20 = scalar_select %p86_p5, %s3499_s27, %s88_s15  }
  0x24   : > { %s463_s16 = sshll.u32 %s456_s24, 4  ;;  %p3678_p6 = pnand %p2870_p4, %p97_p3  ;;  %s3682_s16 = int_to_ptr.vmem [resolvable:$true] %s463_s16 }
  0x25   : > { %4481 = sst [smem:[#allocation36_spill]] %s3669_s20  ;;  %s3685_s15 = sshll.u32 %s3663_s18, 4 }
  0x26   : > { %s4483_s14 = scalar_select %p3678_p6, 1, 0 }
  0x27   : > { %p3692_p8 = pneg %p3678_p6 }
  0x28   : > { %s3675_s23 = scalar_lea.hbm %s4482_s1, %s3666_s19  ;;  %s3024_s13 = scalar_lea.hbm %s4482_s1, 32 }
  0x29   : > { %s3019_s27 = scalar_lea.hbm %s3675_s23, 16  ;;  %p3025_p11 = scmp.lt.u32.totalorder %s3675_s23, %s4482_s1 }
  0x2a   : > { %p3020_p7 = scmp.ne.s32.totalorder %s3675_s23, %s3019_s27  ;;  %p3026_p12 = scmp.lt.u32.totalorder %s3024_s13, %s3019_s27 }
  0x2b   : > { %s4484_s21 = scalar_select %p3692_p8, 1, 0 }
  0x2c   : > { %p3022_p9 = pnand %p3692_p8, %p3020_p7  ;;  %p3027_p13 = por %p3026_p12, %p3025_p11 }
  0x2d   : > { %p3028_p0 = scmp.lt.u32.totalorder %s3019_s27, %s3675_s23 }
  0x2e   : > { %p3023_p10 = pneg %p3022_p9 }
  0x2f   : > { %p3029_p1 = por %p3028_p0, %p3027_p13 }
  0x31   : > { %p3030_p2 = pnand %p3029_p1, %p3023_p10 }
  0x33   : > { %3033 = shalt.err (!%p3030_p2)
}
  0x34   : > { %s3034_s20 = scalar_lea.vmem %s3682_s16, 16  ;;  %s3513_s22 = smov [#allocation6]  }
  0x35   : > { %p3035_p3 = scmp.ne.s32.totalorder %s3682_s16, %s3034_s20  ;;  %s3039_s24 = sshll.u32 %s3513_s22, 4  ;;  %s3040_s24 = int_to_ptr.vmem [resolvable:$false] %s3039_s24 }
  0x36   : > { %s3041_s12 = scalar_lea.vmem %s3040_s24, 32  ;;  %p3042_p7 = scmp.lt.s32.totalorder %s3682_s16, %s3040_s24 }
  0x37   : > { %p3037_p4 = pnand %p3035_p3, %p3692_p8  ;;  %p3043_p9 = scmp.lt.s32.totalorder %s3041_s12, %s3034_s20 }
  0x39   : > { %p3038_p5 = pneg %p3037_p4  ;;  %p3044_p11 = por %p3043_p9, %p3042_p7 }
  0x3b   : > { %p3045_p12 = pnand %p3044_p11, %p3038_p5 }
  0x3d   : > { %3048 = shalt.err (!%p3045_p12)
}
  0x3e   : > { %s4485_s13 = scalar_lea.sflag [#allocation7], %s3660_s17  ;;  %s3718_s27 = sshll.u32 %s3507_s29, 8 }
  0x3f   : > { %2835 = dma.hbm_to_vmem [thread:$0]  (!%p3678_p6), %s3675_s23, 16, %s3682_s16, %s4485_s13  }
  0x40   : > { %s4486_s3 = sld [smem:[#allocation39_spill]]  ;;  %s491_s24 = scalar_lea.vmem [#allocation9], %s3685_s15 }
  0x41   : > { %s498_s12 = sshll.u32 %s491_s24, 4  ;;  %s4454_s1 = scalar_lea.sflag [#allocation10], %s3660_s17  ;;  %s3727_s12 = int_to_ptr.vmem [resolvable:$true] %s498_s12 }
  0x46   : > { %s3724_s20 = scalar_lea.hbm %s4486_s3, %s3718_s27  ;;  %s3054_s13 = scalar_lea.hbm %s4486_s3, 512 }
  0x47   : > { %s3049_s10 = scalar_lea.hbm %s3724_s20, 256  ;;  %p3055_p1 = scmp.lt.u32.totalorder %s3724_s20, %s4486_s3 }
  0x48   : > { %p3050_p10 = scmp.ne.s32.totalorder %s3724_s20, %s3049_s10  ;;  %p3056_p2 = scmp.lt.u32.totalorder %s3054_s13, %s3049_s10 }
  0x49   : > { %p3058_p4 = scmp.lt.u32.totalorder %s3049_s10, %s3724_s20 }
  0x4a   : > { %p3052_p13 = pnand %p3050_p10, %p3692_p8  ;;  %p3057_p3 = por %p3056_p2, %p3055_p1 }
  0x4c   : > { %p3053_p0 = pneg %p3052_p13  ;;  %p3059_p5 = por %p3058_p4, %p3057_p3 }
  0x4e   : > { %p3060_p7 = pnand %p3059_p5, %p3053_p0 }
  0x50   : > { %3063 = shalt.err (!%p3060_p7)
}
  0x51   : > { %s3064_s24 = scalar_lea.vmem %s3727_s12, 256  ;;  %s3514_s23 = smov [#allocation9]  }
  0x52   : > { %p3065_p9 = scmp.ne.s32.totalorder %s3727_s12, %s3064_s24  ;;  %s3069_s16 = sshll.u32 %s3514_s23, 4  ;;  %s3070_s16 = int_to_ptr.vmem [resolvable:$false] %s3069_s16 }
  0x53   : > { %s3071_s28 = scalar_lea.vmem %s3070_s16, 512  ;;  %p3072_p10 = scmp.lt.s32.totalorder %s3727_s12, %s3070_s16 }
  0x54   : > { %p3067_p11 = pnand %p3065_p9, %p3692_p8  ;;  %p3073_p13 = scmp.lt.s32.totalorder %s3071_s28, %s3064_s24 }
  0x56   : > { %p3068_p12 = pneg %p3067_p11  ;;  %p3074_p1 = por %p3073_p13, %p3072_p10 }
  0x58   : > { %p3075_p2 = pnand %p3074_p1, %p3068_p12 }
  0x5a   : > { %3078 = shalt.err (!%p3075_p2)
}
  0x5b   : > { %s4456_s10 = smov 64   ;;  %s3516_s13 = smov 4  }
  0x5c   : > { %2841 = dma.hbm_to_vmem [thread:$0]  (!%p3678_p6), %s3724_s20, 256, %s3727_s12, %s4454_s1, %s4456_s10, %s4456_s10, %s3516_s13  }
  0x5d   : > { %s4487_s5 = sld [smem:[#allocation40_spill]]  ;;  %s529_s16 = scalar_lea.vmem [#allocation12], %s3685_s15 }
  0x5e   : > { %s536_s28 = sshll.u32 %s529_s16, 4  ;;  %s4455_s3 = scalar_lea.sflag [#allocation13], %s3660_s17  ;;  %s3763_s28 = int_to_ptr.vmem [resolvable:$true] %s536_s28 }
  0x63   : > { %s3760_s23 = scalar_lea.hbm %s4487_s5, %s3718_s27  ;;  %s3084_s22 = scalar_lea.hbm %s4487_s5, 512 }
  0x64   : > { %s3079_s8 = scalar_lea.hbm %s3760_s23, 256  ;;  %p3085_p5 = scmp.lt.u32.totalorder %s3760_s23, %s4487_s5 }
  0x65   : > { %p3080_p0 = scmp.ne.s32.totalorder %s3760_s23, %s3079_s8  ;;  %p3086_p7 = scmp.lt.u32.totalorder %s3084_s22, %s3079_s8 }
  0x66   : > { %p3088_p11 = scmp.lt.u32.totalorder %s3079_s8, %s3760_s23 }
  0x67   : > { %p3082_p3 = pnand %p3080_p0, %p3692_p8  ;;  %p3087_p9 = por %p3086_p7, %p3085_p5 }
  0x69   : > { %p3083_p4 = pneg %p3082_p3  ;;  %p3089_p12 = por %p3088_p11, %p3087_p9 }
  0x6b   : > { %p3090_p10 = pnand %p3089_p12, %p3083_p4 }
  0x6d   : > { %3093 = shalt.err (!%p3090_p10)
}
  0x6e   : > { %s3094_s16 = scalar_lea.vmem %s3763_s28, 256  ;;  %s3517_s20 = smov [#allocation12]  }
  0x6f   : > { %p3095_p13 = scmp.ne.s32.totalorder %s3763_s28, %s3094_s16  ;;  %s3099_s12 = sshll.u32 %s3517_s20, 4  ;;  %s3100_s12 = int_to_ptr.vmem [resolvable:$false] %s3099_s12 }
  0x70   : > { %s3101_s1 = scalar_lea.vmem %s3100_s12, 512  ;;  %p3102_p0 = scmp.lt.s32.totalorder %s3763_s28, %s3100_s12 }
  0x71   : > { %p3097_p1 = pnand %p3095_p13, %p3692_p8  ;;  %p3103_p3 = scmp.lt.s32.totalorder %s3101_s1, %s3094_s16 }
  0x73   : > { %p3098_p2 = pneg %p3097_p1  ;;  %p3104_p5 = por %p3103_p3, %p3102_p0 }
  0x75   : > { %p3105_p7 = pnand %p3104_p5, %p3098_p2 }
  0x77   : > { %3108 = shalt.err (!%p3105_p7)
}
  0x78   : > { %2847 = dma.hbm_to_vmem [thread:$0]  (!%p3678_p6), %s3760_s23, 256, %s3763_s28, %s4455_s3, %s4456_s10, %s4456_s10, %s3516_s13  }
  0x79   : > { %s4488_s7 = sld [smem:[#allocation41_spill]]  ;;  %s566_s16 = scalar_lea.vmem [#allocation15], %s3663_s18 }
  0x7a   : > { %s573_s20 = sshll.u32 %s566_s16, 4  ;;  %s4468_s12 = scalar_lea.sflag [#allocation16], %s3660_s17  ;;  %s574_s20 = int_to_ptr.vmem [resolvable:$true] %s573_s20 }
  0x7f   : > { %s3796_s24 = scalar_lea.hbm %s4488_s7, %s3666_s19  ;;  %s3114_s28 = scalar_lea.hbm %s4488_s7, 32 }
  0x80   : > { %s3109_s1 = scalar_lea.hbm %s3796_s24, 16  ;;  %p3115_p12 = scmp.lt.u32.totalorder %s3796_s24, %s4488_s7 }
  0x81   : > { %p3110_p4 = scmp.ne.s32.totalorder %s3796_s24, %s3109_s1  ;;  %p3116_p10 = scmp.lt.u32.totalorder %s3114_s28, %s3109_s1 }
  0x82   : > { %p3118_p1 = scmp.lt.u32.totalorder %s3109_s1, %s3796_s24 }
  0x83   : > { %p3112_p9 = pnand %p3110_p4, %p3692_p8  ;;  %p3117_p13 = por %p3116_p10, %p3115_p12 }
  0x85   : > { %p3113_p11 = pneg %p3112_p9  ;;  %p3119_p2 = por %p3118_p1, %p3117_p13 }
  0x87   : > { %p3120_p0 = pnand %p3119_p2, %p3113_p11 }
  0x89   : > { %3123 = shalt.err (!%p3120_p0)
}
  0x8a   : > { %s3124_s16 = scalar_lea.vmem %s574_s20, 16  ;;  %s3518_s3 = smov [#allocation15]  }
  0x8b   : > { %p3125_p3 = scmp.ne.s32.totalorder %s574_s20, %s3124_s16  ;;  %s3129_s10 = sshll.u32 %s3518_s3, 4  ;;  %s3130_s10 = int_to_ptr.vmem [resolvable:$false] %s3129_s10 }
  0x8c   : > { %s3131_s5 = scalar_lea.vmem %s3130_s10, 32  ;;  %p3132_p4 = scmp.lt.s32.totalorder %s574_s20, %s3130_s10 }
  0x8d   : > { %p3127_p5 = pnand %p3125_p3, %p3692_p8  ;;  %p3133_p9 = scmp.lt.s32.totalorder %s3131_s5, %s3124_s16 }
  0x8f   : > { %p3128_p7 = pneg %p3127_p5  ;;  %p3134_p6 = por %p3133_p9, %p3132_p4 }
  0x91   : > { %p3135_p10 = pnand %p3134_p6, %p3128_p7 }
  0x93   : > { %3138 = shalt.err (!%p3135_p10)
}
  0x94   : > { %p4489_p12 = scmp.ne.s32.totalorder %s4483_s14, 0  ;;  %s3823_s23 = scalar_lea.hbm %s4443_s9, %s3718_s27 }
  0x95   : > { %s601_s10 = scalar_lea.vmem [#allocation18], %s3685_s15  ;;  %s2557_s8 = sshll.u32 %s3663_s18, 5 }
  0x96   : > { %2853 = dma.hbm_to_vmem [thread:$0]  (!%p4489_p12), %s3796_s24, 16, %s574_s20, %s4468_s12  }
  0x97   : > { %s608_s28 = sshll.u32 %s601_s10, 4  ;;  %s4461_s22 = scalar_lea.sflag [#allocation19], %s3660_s17  ;;  %s3826_s28 = int_to_ptr.vmem [resolvable:$true] %s608_s28 }
  0x98   : > { %s3139_s16 = scalar_lea.hbm %s3823_s23, 256  ;;  %s3144_s27 = scalar_lea.hbm %s4443_s9, 512 }
  0x99   : > { %p3140_p6 = scmp.ne.s32.totalorder %s3823_s23, %s3139_s16  ;;  %p3145_p1 = scmp.lt.u32.totalorder %s3823_s23, %s4443_s9 }
  0x9a   : > { %p3146_p2 = scmp.lt.u32.totalorder %s3144_s27, %s3139_s16  ;;  %p3148_p3 = scmp.lt.u32.totalorder %s3139_s16, %s3823_s23 }
  0x9b   : > { %p3142_p11 = pnand %p3140_p6, %p3692_p8 }
  0x9c   : > { %p3147_p0 = por %p3146_p2, %p3145_p1 }
  0x9d   : > { %p3143_p13 = pneg %p3142_p11 }
  0x9e   : > { %p3149_p5 = por %p3148_p3, %p3147_p0 }
  0xa0   : > { %p3150_p7 = pnand %p3149_p5, %p3143_p13 }
  0xa2   : > { %3153 = shalt.err (!%p3150_p7)
}
  0xa3   : > { %s3154_s15 = scalar_lea.vmem %s3826_s28, 256  ;;  %s3519_s3 = smov [#allocation18]  }
  0xa4   : > { %p3155_p4 = scmp.ne.s32.totalorder %s3826_s28, %s3154_s15  ;;  %s3159_s10 = sshll.u32 %s3519_s3, 4  ;;  %s3160_s10 = int_to_ptr.vmem [resolvable:$false] %s3159_s10 }
  0xa5   : > { %s3161_s24 = scalar_lea.vmem %s3160_s10, 512  ;;  %p3162_p6 = scmp.lt.s32.totalorder %s3826_s28, %s3160_s10 }
  0xa6   : > { %p3157_p9 = pnand %p3155_p4, %p3692_p8  ;;  %p3163_p11 = scmp.lt.s32.totalorder %s3161_s24, %s3154_s15 }
  0xa8   : > { %p3158_p10 = pneg %p3157_p9  ;;  %p3164_p1 = por %p3163_p11, %p3162_p6 }
  0xaa   : > { %p3165_p2 = pnand %p3164_p1, %p3158_p10 }
  0xac   : > { %3168 = shalt.err (!%p3165_p2)
}
  0xad   : > { %s4490_s16 = smov 64   ;;  %s2615_s20 = sshll.u32 %s3507_s29, 9 }
  0xae   : > { %2859 = dma.hbm_to_vmem [thread:$0]  (!%p4489_p12), %s3823_s23, 256, %s3826_s28, %s4461_s22, %s4490_s16, %s4490_s16, %s3516_s13  }
  0xaf   : > { %s3860_s1 = scalar_lea.hbm %s4445_s11, %s2615_s20  ;;  %s639_s15 = scalar_lea.vmem [#allocation21], %s2557_s8 }
  0xb0   : > { %s646_s3 = sshll.u32 %s639_s15, 4  ;;  %s4460_s10 = scalar_lea.sflag [#allocation22], %s3660_s17  ;;  %s3864_s3 = int_to_ptr.vmem [resolvable:$true] %s646_s3 }
  0xb1   : > { %s3169_s24 = scalar_lea.hbm %s3860_s1, 512  ;;  %s3174_s20 = scalar_lea.hbm %s4445_s11, 1024 }
  0xb2   : > { %p3170_p13 = scmp.ne.s32.totalorder %s3860_s1, %s3169_s24  ;;  %p3175_p5 = scmp.lt.u32.totalorder %s3860_s1, %s4445_s11 }
  0xb3   : > { %p3176_p7 = scmp.lt.u32.totalorder %s3174_s20, %s3169_s24  ;;  %p3178_p9 = scmp.lt.u32.totalorder %s3169_s24, %s3860_s1 }
  0xb4   : > { %p3172_p0 = pnand %p3170_p13, %p3692_p8 }
  0xb5   : > { %p3177_p4 = por %p3176_p7, %p3175_p5 }
  0xb6   : > { %p3173_p3 = pneg %p3172_p0 }
  0xb7   : > { %p3179_p10 = por %p3178_p9, %p3177_p4 }
  0xb9   : > { %p3180_p6 = pnand %p3179_p10, %p3173_p3 }
  0xbb   : > { %3183 = shalt.err (!%p3180_p6)
}
  0xbc   : > { %s3184_s8 = scalar_lea.vmem %s3864_s3, 512  ;;  %s3520_s15 = smov [#allocation21]  }
  0xbd   : > { %p3185_p11 = scmp.ne.s32.totalorder %s3864_s3, %s3184_s8  ;;  %s3189_s23 = sshll.u32 %s3520_s15, 4  ;;  %s3190_s23 = int_to_ptr.vmem [resolvable:$false] %s3189_s23 }
  0xbe   : > { %s3191_s28 = scalar_lea.vmem %s3190_s23, 1024  ;;  %p3192_p13 = scmp.lt.s32.totalorder %s3864_s3, %s3190_s23 }
  0xbf   : > { %p3187_p1 = pnand %p3185_p11, %p3692_p8  ;;  %p3193_p0 = scmp.lt.s32.totalorder %s3191_s28, %s3184_s8 }
  0xc1   : > { %p3188_p2 = pneg %p3187_p1  ;;  %p3194_p5 = por %p3193_p0, %p3192_p13 }
  0xc3   : > { %p3195_p7 = pnand %p3194_p5, %p3188_p2 }
  0xc5   : > { %3198 = shalt.err (!%p3195_p7)
}
  0xc6   : > { %2865 = dma.hbm_to_vmem [thread:$0]  (!%p4489_p12), %s3860_s1, 512, %s3864_s3, %s4460_s10, %s4490_s16, %s4490_s16, %s3516_s13  }
  0xc7   : > { %s3894_s24 = sadd.s32 4294967295, %s3511_s30   ;;  %p101_p3 = scmp.ne.s32.totalorder %s3495_s26, %s3491_s25 }
  0xc8   : > { %p4462_p4 = scmp.eq.s32.totalorder %s3894_s24, 0  ;;  %p2538_p9 = scmp.ge.s32.totalorder %s3511_s30, 1 }
  0xc9   : > { %p424_p10 = scmp.lt.s32.totalorder %s3511_s30, 3  ;;  %s3521_s13 = smov [#allocation3]  }
  0xca   : > { %p3903_p6 = por %p4462_p4, %p101_p3  ;;  %s439_s16 = sshll.u32 %s3521_s13, 4  ;;  %s440_s16 = int_to_ptr.vmem [resolvable:$true] %s439_s16 }
  0xcb   : > { %p3907_p11 = pnand %p2538_p9, %p424_p10  ;;  %s3923_s5 = scalar_lea.hbm %s4436_s2, %s3666_s19 }
  0xcc   : > { %s4491_s20 = scalar_select %p3903_p6, 1, 0 }
  0xcd   : > { %s4492_s27 = scalar_select %p3907_p11, 1, 0 }
  0xce   : > { %p2828_p1 = pneg %p3907_p11  ;;  %s473_s8 = scalar_lea.vmem [#allocation8], %s3663_s18 }
  0xcf   : > { %s480_s15 = sshll.u32 %s473_s8, 4  ;;  %s4494_s0 = sld [smem:[#allocation37_spill]]  ;;  %s3926_s15 = int_to_ptr.vmem [resolvable:$true] %s480_s15 }
  0xd0   : > { %p3915_p2 = pnand %p2828_p1, %p4462_p4 }
  0xd2   : > { %p3201_p0 = pneg %p3915_p2 }
  0xd5   : > { %s3199_s13 = scalar_lea.hbm %s4494_s0, 256 }
  0xd6   : > { %p3200_p13 = scmp.ne.s32.totalorder %s4494_s0, %s3199_s13  ;;  %p3206_p3 = scmp.lt.u32.totalorder %s3199_s13, %s4494_s0 }
  0xd8   : > { %p3202_p5 = pnand %p3201_p0, %p3200_p13 }
  0xda   : > { %p3203_p7 = pneg %p3202_p5 }
  0xdc   : > { %p3208_p9 = pnand %p3206_p3, %p3203_p7 }
  0xde   : > { %3211 = shalt.err (!%p3208_p9)
}
  0xdf   : > { %s3212_s8 = scalar_lea.vmem %s440_s16, 256  ;;  %p3220_p6 = scmp.lt.s32.totalorder %s440_s16, %s440_s16 }
  0xe0   : > { %p3213_p10 = scmp.ne.s32.totalorder %s440_s16, %s3212_s8  ;;  %p3221_p11 = scmp.lt.s32.totalorder %s3212_s8, %s3212_s8 }
  0xe2   : > { %p3215_p1 = pnand %p3213_p10, %p3201_p0  ;;  %p3222_p12 = por %p3221_p11, %p3220_p6 }
  0xe4   : > { %p3216_p4 = pneg %p3215_p1 }
  0xe6   : > { %p3223_p8 = pnand %p3222_p12, %p3216_p4 }
  0xe8   : > { %3226 = shalt.err (!%p3223_p8)
}
  0xe9   : > { %s3522_s22 = smov 128   ;;  %s3523_s10 = smov 8  }
  0xea   : > { %2831 = dma.hbm_to_vmem [thread:$0]  (!%p3915_p2), %s4494_s0, 256, %s440_s16, [#allocation4], %s3522_s22, %s3522_s22, %s3523_s10  }
  0xeb   : > { %s3227_s13 = scalar_lea.hbm %s3923_s5, 16  ;;  %p4495_p0 = scmp.ne.s32.totalorder %s4484_s21, 0 }
  0xec   : > { %p3228_p13 = scmp.ne.s32.totalorder %s3923_s5, %s3227_s13  ;;  %s3232_s8 = scalar_lea.hbm %s4436_s2, 32 }
  0xed   : > { %p3233_p8 = scmp.lt.u32.totalorder %s3923_s5, %s4436_s2  ;;  %p3234_p12 = scmp.lt.u32.totalorder %s3232_s8, %s3227_s13 }
  0xee   : > { %p3230_p5 = pnand %p3228_p13, %p4495_p0  ;;  %p3236_p11 = scmp.lt.u32.totalorder %s3227_s13, %s3923_s5 }
  0xef   : > { %p3235_p4 = por %p3234_p12, %p3233_p8 }
  0xf0   : > { %p3231_p6 = pneg %p3230_p5 }
  0xf1   : > { %p3237_p7 = por %p3236_p11, %p3235_p4 }
  0xf3   : > { %p3238_p3 = pnand %p3237_p7, %p3231_p6 }
  0xf5   : > { %3241 = shalt.err (!%p3238_p3)
}
  0xf6   : > { %s3242_s16 = scalar_lea.vmem %s3926_s15, 16  ;;  %s3524_s25 = smov [#allocation8]  }
  0xf7   : > { %p3243_p2 = scmp.ne.s32.totalorder %s3926_s15, %s3242_s16  ;;  %s3247_s22 = sshll.u32 %s3524_s25, 4  ;;  %s3248_s22 = int_to_ptr.vmem [resolvable:$false] %s3247_s22 }
  0xf8   : > { %s3249_s7 = scalar_lea.vmem %s3248_s22, 32  ;;  %p3250_p1 = scmp.lt.s32.totalorder %s3926_s15, %s3248_s22 }
  0xf9   : > { %p3245_p9 = pnand %p3243_p2, %p4495_p0  ;;  %p3251_p13 = scmp.lt.s32.totalorder %s3249_s7, %s3242_s16 }
  0xfb   : > { %p3246_p10 = pneg %p3245_p9  ;;  %p3252_p5 = por %p3251_p13, %p3250_p1 }
  0xfd   : > { %p3253_p8 = pnand %p3252_p5, %p3246_p10 }
  0xff   : > { %3256 = shalt.err (!%p3253_p8)
}
 0x100   : > { %p4496_p6 = scmp.ne.s32.totalorder %s4483_s14, 0  ;;  %s4497_s12 = scalar_lea.sflag [#allocation7], %s3660_s17 }
 0x101   : > { %s3971_s28 = scalar_lea.hbm %s4438_s4, %s3666_s19  ;;  %s511_s13 = scalar_lea.vmem [#allocation11], %s3663_s18 }
 0x102   : > { %2838 = dma.hbm_to_vmem [thread:$0]  (!%p4496_p6), %s3923_s5, 16, %s3926_s15, %s4497_s12  }
 0x103   : > { %s518_s1 = sshll.u32 %s511_s13, 4  ;;  %s3257_s3 = scalar_lea.hbm %s3971_s28, 16  ;;  %s519_s1 = int_to_ptr.vmem [resolvable:$true] %s518_s1 }
 0x104   : > { %p3258_p12 = scmp.ne.s32.totalorder %s3971_s28, %s3257_s3  ;;  %s3262_s5 = scalar_lea.hbm %s4438_s4, 32 }
 0x105   : > { %p3263_p7 = scmp.lt.u32.totalorder %s3971_s28, %s4438_s4  ;;  %p3264_p3 = scmp.lt.u32.totalorder %s3262_s5, %s3257_s3 }
 0x106   : > { %p3260_p4 = pnand %p3258_p12, %p4495_p0  ;;  %p3266_p9 = scmp.lt.u32.totalorder %s3257_s3, %s3971_s28 }
 0x107   : > { %p3265_p2 = por %p3264_p3, %p3263_p7 }
 0x108   : > { %p3261_p11 = pneg %p3260_p4 }
 0x109   : > { %p3267_p10 = por %p3266_p9, %p3265_p2 }
 0x10b   : > { %p3268_p1 = pnand %p3267_p10, %p3261_p11 }
 0x10d   : > { %3271 = shalt.err (!%p3268_p1)
}
 0x10e   : > { %s3272_s22 = scalar_lea.vmem %s519_s1, 16  ;;  %s3525_s7 = smov [#allocation11]  }
 0x10f   : > { %p3273_p13 = scmp.ne.s32.totalorder %s519_s1, %s3272_s22  ;;  %s3277_s12 = sshll.u32 %s3525_s7, 4  ;;  %s3278_s12 = int_to_ptr.vmem [resolvable:$false] %s3277_s12 }
 0x110   : > { %s3279_s10 = scalar_lea.vmem %s3278_s12, 32  ;;  %p3280_p12 = scmp.lt.s32.totalorder %s519_s1, %s3278_s12 }
 0x111   : > { %p3275_p5 = pnand %p3273_p13, %p4495_p0  ;;  %p3281_p4 = scmp.lt.s32.totalorder %s3279_s10, %s3272_s22 }
 0x113   : > { %p3276_p8 = pneg %p3275_p5  ;;  %p3282_p6 = por %p3281_p4, %p3280_p12 }
 0x115   : > { %p3283_p3 = pnand %p3282_p6, %p3276_p8 }
 0x117   : > { %3286 = shalt.err (!%p3283_p3)
}
 0x118   : > { %p4498_p7 = scmp.ne.s32.totalorder %s4483_s14, 0  ;;  %s4499_s23 = scalar_lea.sflag [#allocation10], %s3660_s17 }
 0x119   : > { %s3997_s8 = scalar_lea.hbm %s4440_s6, %s3666_s19  ;;  %s549_s16 = scalar_lea.vmem [#allocation14], %s3663_s18 }
 0x11a   : > { %2844 = dma.hbm_to_vmem [thread:$0]  (!%p4498_p7), %s3971_s28, 16, %s519_s1, %s4499_s23  }
 0x11b   : > { %s556_s5 = sshll.u32 %s549_s16, 4  ;;  %s3287_s15 = scalar_lea.hbm %s3997_s8, 16  ;;  %s557_s5 = int_to_ptr.vmem [resolvable:$true] %s556_s5 }
 0x11c   : > { %p3288_p6 = scmp.ne.s32.totalorder %s3997_s8, %s3287_s15  ;;  %s3292_s28 = scalar_lea.hbm %s4440_s6, 32 }
 0x11d   : > { %p3293_p9 = scmp.lt.u32.totalorder %s3997_s8, %s4440_s6  ;;  %p3294_p10 = scmp.lt.u32.totalorder %s3292_s28, %s3287_s15 }
 0x11e   : > { %p3290_p11 = pnand %p3288_p6, %p4495_p0  ;;  %p3296_p13 = scmp.lt.u32.totalorder %s3287_s15, %s3997_s8 }
 0x11f   : > { %p3295_p1 = por %p3294_p10, %p3293_p9 }
 0x120   : > { %p3291_p2 = pneg %p3290_p11 }
 0x121   : > { %p3297_p5 = por %p3296_p13, %p3295_p1 }
 0x123   : > { %p3298_p8 = pnand %p3297_p5, %p3291_p2 }
 0x125   : > { %3301 = shalt.err (!%p3298_p8)
}
 0x126   : > { %s3302_s12 = scalar_lea.vmem %s557_s5, 16  ;;  %s3526_s10 = smov [#allocation14]  }
 0x127   : > { %p3303_p12 = scmp.ne.s32.totalorder %s557_s5, %s3302_s12  ;;  %s3307_s23 = sshll.u32 %s3526_s10, 4  ;;  %s3308_s23 = int_to_ptr.vmem [resolvable:$false] %s3307_s23 }
 0x128   : > { %s3309_s13 = scalar_lea.vmem %s3308_s23, 32  ;;  %p3310_p6 = scmp.lt.s32.totalorder %s557_s5, %s3308_s23 }
 0x129   : > { %p3305_p4 = pnand %p3303_p12, %p4495_p0  ;;  %p3311_p11 = scmp.lt.s32.totalorder %s3309_s13, %s3302_s12 }
 0x12b   : > { %p3306_p3 = pneg %p3305_p4  ;;  %p3312_p7 = por %p3311_p11, %p3310_p6 }
 0x12d   : > { %p3313_p9 = pnand %p3312_p7, %p3306_p3 }
 0x12f   : > { %3316 = shalt.err (!%p3313_p9)
}
 0x130   : > { %p4500_p10 = scmp.ne.s32.totalorder %s4483_s14, 0  ;;  %s4501_s3 = scalar_lea.sflag [#allocation13], %s3660_s17 }
 0x131   : > { %s4502_s25 = sld [smem:[#allocation42_spill]]  ;;  %s583_s1 = scalar_lea.vmem [#allocation17], %s3663_s18 }
 0x132   : > { %2850 = dma.hbm_to_vmem [thread:$0]  (!%p4500_p10), %s3997_s8, 16, %s557_s5, %s4501_s3  }
 0x133   : > { %s590_s7 = sshll.u32 %s583_s1, 4  ;;  %s591_s7 = int_to_ptr.vmem [resolvable:$true] %s590_s7 }
 0x137   : > { %s4503_s22 = smov %s4502_s25  ;;  %s4023_s28 = scalar_lea.hbm %s4502_s25, %s3666_s19 }
 0x138   : > { %s3317_s12 = scalar_lea.hbm %s4023_s28, 16  ;;  %s3322_s8 = scalar_lea.hbm %s4503_s22, 32 }
 0x139   : > { %p3318_p7 = scmp.ne.s32.totalorder %s4023_s28, %s3317_s12  ;;  %p3323_p13 = scmp.lt.u32.totalorder %s4023_s28, %s4503_s22 }
 0x13a   : > { %p3324_p5 = scmp.lt.u32.totalorder %s3322_s8, %s3317_s12  ;;  %p3326_p12 = scmp.lt.u32.totalorder %s3317_s12, %s4023_s28 }
 0x13b   : > { %p3320_p2 = pnand %p3318_p7, %p4495_p0 }
 0x13c   : > { %p3325_p8 = por %p3324_p5, %p3323_p13 }
 0x13d   : > { %p3321_p1 = pneg %p3320_p2 }
 0x13e   : > { %p3327_p4 = por %p3326_p12, %p3325_p8 }
 0x140   : > { %p3328_p3 = pnand %p3327_p4, %p3321_p1 }
 0x142   : > { %3331 = shalt.err (!%p3328_p3)
}
 0x143   : > { %s3332_s3 = scalar_lea.vmem %s591_s7, 16  ;;  %s3527_s16 = smov [#allocation17]  }
 0x144   : > { %p3333_p6 = scmp.ne.s32.totalorder %s591_s7, %s3332_s3  ;;  %s3337_s15 = sshll.u32 %s3527_s16, 4  ;;  %s3338_s15 = int_to_ptr.vmem [resolvable:$false] %s3337_s15 }
 0x145   : > { %s3339_s25 = scalar_lea.vmem %s3338_s15, 32  ;;  %p3340_p7 = scmp.lt.s32.totalorder %s591_s7, %s3338_s15 }
 0x146   : > { %p3335_p11 = pnand %p3333_p6, %p4495_p0  ;;  %p3341_p2 = scmp.lt.s32.totalorder %s3339_s25, %s3332_s3 }
 0x148   : > { %p3336_p9 = pneg %p3335_p11  ;;  %p3342_p10 = por %p3341_p2, %p3340_p7 }
 0x14a   : > { %p3343_p5 = pnand %p3342_p10, %p3336_p9 }
 0x14c   : > { %3346 = shalt.err (!%p3343_p5)
}
 0x14d   : > { %p4504_p13 = scmp.ne.s32.totalorder %s4483_s14, 0  ;;  %s4505_s1 = scalar_lea.sflag [#allocation16], %s3660_s17 }
 0x14e   : > { %s4506_s23 = sld [smem:[#allocation43_spill]]  ;;  %s621_s5 = scalar_lea.vmem [#allocation20], %s3663_s18 }
 0x14f   : > { %2856 = dma.hbm_to_vmem [thread:$0]  (!%p4504_p13), %s4023_s28, 16, %s591_s7, %s4505_s1  }
 0x150   : > { %s628_s13 = sshll.u32 %s621_s5, 4  ;;  %s629_s13 = int_to_ptr.vmem [resolvable:$true] %s628_s13 }
 0x154   : > { %s4049_s8 = scalar_lea.hbm %s4506_s23, %s3666_s19  ;;  %s3352_s28 = scalar_lea.hbm %s4506_s23, 32 }
 0x155   : > { %s3347_s3 = scalar_lea.hbm %s4049_s8, 16  ;;  %p3353_p12 = scmp.lt.u32.totalorder %s4049_s8, %s4506_s23 }
 0x156   : > { %p3348_p10 = scmp.ne.s32.totalorder %s4049_s8, %s3347_s3  ;;  %p3354_p4 = scmp.lt.u32.totalorder %s3352_s28, %s3347_s3 }
 0x157   : > { %p3356_p6 = scmp.lt.u32.totalorder %s3347_s3, %s4049_s8 }
 0x158   : > { %p3350_p1 = pnand %p3348_p10, %p4495_p0  ;;  %p3355_p3 = por %p3354_p4, %p3353_p12 }
 0x15a   : > { %p3351_p8 = pneg %p3350_p1  ;;  %p3357_p11 = por %p3356_p6, %p3355_p3 }
 0x15c   : > { %p3358_p9 = pnand %p3357_p11, %p3351_p8 }
 0x15e   : > { %3361 = shalt.err (!%p3358_p9)
}
 0x15f   : > { %s3362_s1 = scalar_lea.vmem %s629_s13, 16  ;;  %s3528_s12 = smov [#allocation20]  }
 0x160   : > { %p3363_p7 = scmp.ne.s32.totalorder %s629_s13, %s3362_s1  ;;  %s3367_s10 = sshll.u32 %s3528_s12, 4  ;;  %s3368_s10 = int_to_ptr.vmem [resolvable:$false] %s3367_s10 }
 0x161   : > { %s3369_s5 = scalar_lea.vmem %s3368_s10, 32  ;;  %p3370_p10 = scmp.lt.s32.totalorder %s629_s13, %s3368_s10 }
 0x162   : > { %p3365_p2 = pnand %p3363_p7, %p4495_p0  ;;  %p3371_p1 = scmp.lt.s32.totalorder %s3369_s5, %s3362_s1 }
 0x164   : > { %p3366_p5 = pneg %p3365_p2  ;;  %p3372_p13 = por %p3371_p1, %p3370_p10 }
 0x166   : > { %p3373_p4 = pnand %p3372_p13, %p3366_p5 }
 0x168   : > { %3376 = shalt.err (!%p3373_p4)
}
 0x169   : > { %p4507_p12 = scmp.ne.s32.totalorder %s4483_s14, 0  ;;  %s4508_s3 = scalar_lea.sflag [#allocation19], %s3660_s17 }
 0x16a   : > { %s4509_s28 = sld [smem:[#allocation44_spill]]  ;;  %s659_s1 = scalar_lea.vmem [#allocation23], %s3663_s18 }
 0x16b   : > { %2862 = dma.hbm_to_vmem [thread:$0]  (!%p4507_p12), %s4049_s8, 16, %s629_s13, %s4508_s3  }
 0x16c   : > { %s666_s12 = sshll.u32 %s659_s1, 4  ;;  %s667_s12 = int_to_ptr.vmem [resolvable:$true] %s666_s12 }
 0x170   : > { %s4510_s7 = smov %s4509_s28  ;;  %s4075_s25 = scalar_lea.hbm %s4509_s28, %s3666_s19 }
 0x171   : > { %s3377_s10 = scalar_lea.hbm %s4075_s25, 16  ;;  %s3382_s8 = scalar_lea.hbm %s4510_s7, 32 }
 0x172   : > { %p3378_p13 = scmp.ne.s32.totalorder %s4075_s25, %s3377_s10  ;;  %p3383_p6 = scmp.lt.u32.totalorder %s4075_s25, %s4510_s7 }
 0x173   : > { %p3384_p11 = scmp.lt.u32.totalorder %s3382_s8, %s3377_s10  ;;  %p3386_p7 = scmp.lt.u32.totalorder %s3377_s10, %s4075_s25 }
 0x174   : > { %p3380_p8 = pnand %p3378_p13, %p4495_p0 }
 0x175   : > { %p3385_p9 = por %p3384_p11, %p3383_p6 }
 0x176   : > { %p3381_p3 = pneg %p3380_p8 }
 0x177   : > { %p3387_p2 = por %p3386_p7, %p3385_p9 }
 0x179   : > { %p3388_p5 = pnand %p3387_p2, %p3381_p3 }
 0x17b   : > { %3391 = shalt.err (!%p3388_p5)
}
 0x17c   : > { %s3392_s18 = scalar_lea.vmem %s667_s12, 16  ;;  %s3529_s19 = smov [#allocation23]  }
 0x17d   : > { %p3393_p10 = scmp.ne.s32.totalorder %s667_s12, %s3392_s18  ;;  %s3397_s16 = sshll.u32 %s3529_s19, 4  ;;  %s3398_s16 = int_to_ptr.vmem [resolvable:$false] %s3397_s16 }
 0x17e   : > { %s3399_s0 = scalar_lea.vmem %s3398_s16, 32  ;;  %p3400_p13 = scmp.lt.s32.totalorder %s667_s12, %s3398_s16 }
 0x17f   : > { %p3395_p1 = pnand %p3393_p10, %p4495_p0  ;;  %p3401_p8 = scmp.lt.s32.totalorder %s3399_s0, %s3392_s18 }
 0x181   : > { %p3396_p4 = pneg %p3395_p1  ;;  %p3402_p12 = por %p3401_p8, %p3400_p13 }
 0x183   : > { %p3403_p6 = pnand %p3402_p12, %p3396_p4 }
 0x185   : > { %3406 = shalt.err (!%p3403_p6)
}
 0x186   : > { %p4511_p11 = scmp.ne.s32.totalorder %s4483_s14, 0  ;;  %s4512_s15 = scalar_lea.sflag [#allocation22], %s3660_s17 }
 0x187   : > { %p4513_p3 = scmp.ne.s32.totalorder %s4492_s27, 0 }
 0x188   : > { %2868 = dma.hbm_to_vmem [thread:$0]  (!%p4511_p11), %s4075_s25, 16, %s667_s12, %s4512_s15  }
 0x189   : > { %675 = sbr.rel (%p4513_p3) target bundleno = 4621 (0x120d), region = 72  ;;  %p4514_p0 = scmp.eq.s32.totalorder (!%p4513_p3), %s3894_s24, 0 }
 0x190   : > { %3458 = dma.done.wait (%p4514_p0), [#allocation4], 256   ;;  %p4515_p9 = pmov %p4514_p0 }
 0x191   : > { %s4104_s21 = sand.u32 1, %s3894_s24   ;;  %s4107_s14 = sand.u32 1, %s3495_s26  }
 0x192   : > { %3460 = vsyncadd (%p4515_p9), [#allocation4], 4294967040  ;;  %s682_s17 = scalar_lea.sflag [#allocation7], %s4104_s21  ;;  %s684_s28 = scalar_lea.vmem [#allocation6], %s4107_s14 }
 0x193   : > { %p4516_p12 = scmp.ne.s32.totalorder %s4491_s20, 0 }
 0x195   : > { %3462 = dma.done.wait (%p4516_p12), %s682_s17, 32  }
 0x196   : > { %3464 = vsyncadd (%p4516_p12), %s682_s17, 4294967264  ;;  %s4116_s27 = sshll.u32 %s4107_s14, 4  ;;  %s692_s25 = scalar_lea.vmem [#allocation8], %s4107_s14 }
 0x197   : > { %s698_s1 = scalar_lea.sflag [#allocation10], %s4104_s21  ;;  %s701_s12 = scalar_lea.vmem [#allocation9], %s4116_s27 }
 0x198   : > { %3466 = dma.done.wait (%p4516_p12), %s698_s1, 272  }
 0x199   : > { %3468 = vsyncadd (%p4516_p12), %s698_s1, 4294967024  ;;  %s709_s10 = scalar_lea.vmem [#allocation11], %s4107_s14  ;;  %s715_s5 = scalar_lea.sflag [#allocation13], %s4104_s21 }
 0x19a   : > { %s718_s8 = scalar_lea.vmem [#allocation12], %s4116_s27 }
 0x19b   : > { %3470 = dma.done.wait (%p4516_p12), %s715_s5, 272  }
 0x19c   : > { %3472 = vsyncadd (%p4516_p12), %s715_s5, 4294967024  ;;  %s726_s13 = scalar_lea.vmem [#allocation14], %s4107_s14  ;;  %s732_s3 = scalar_lea.sflag [#allocation16], %s4104_s21 }
 0x19d   : > { %s734_s18 = scalar_lea.vmem [#allocation15], %s4107_s14 }
 0x19e   : > { %3474 = dma.done.wait (%p4516_p12), %s732_s3, 32  }
 0x19f   : > { %3476 = vsyncadd (%p4516_p12), %s732_s3, 4294967264  ;;  %s748_s16 = scalar_lea.sflag [#allocation19], %s4104_s21  ;;  %s751_s0 = scalar_lea.vmem [#allocation18], %s4116_s27 }
 0x1a0   : > { %3478 = dma.done.wait (%p4516_p12), %s748_s16, 272  }
 0x1a1   : > { %3480 = vsyncadd (%p4516_p12), %s748_s16, 4294967024  ;;  %s2566_s15 = sshll.u32 %s4107_s14, 5  ;;  %s759_s17 = scalar_lea.vmem [#allocation20], %s4107_s14 }
 0x1a2   : > { %s765_s1 = scalar_lea.sflag [#allocation22], %s4104_s21  ;;  %s4149_s5 = scalar_lea.vmem [#allocation21], %s2566_s15 }
 0x1a3   : > { %3482 = dma.done.wait (%p4516_p12), %s765_s1, 528  }
 0x1a4   : > { %3484 = vsyncadd (%p4516_p12), %s765_s1, 4294966768  ;;  %s776_s3 = scalar_lea.vmem [#allocation23], %s4107_s14  ;;  %s4517_s19 = sld [smem:[#allocation34_spill]] }
 0x1aa   : > { %p2567_p7 = scmp.ne.s32.totalorder %s4517_s19, 0 }
 0x1ab   : > { %v868_v0 = vld [vmem:[#allocation3] sm:$0xff] (!%p2567_p7)  ;;  %vm870_vm0 = vcmask (!%p2567_p7), 261120   ;;  %v869_v1 = vld [vmem:[#allocation3 + $0x8] sm:$0xff] (!%p2567_p7)  ;;  %v873_v2 = vlaneseq (!%p2567_p7)  ;;  %vm879_vm1 = vcmask (!%p2567_p7), 64512   ;;  %v3530_v5 = vmov (!%p2567_p7), -1e+30  }
 0x1ac   : > { %867 = sbr.rel (%p2567_p7) target bundleno = 435 (0x1b3), region = 128  ;;  %871 = vst.msk [vmem:[#allocation24] sm:$0xff] (!%p2567_p7), %vm870_vm0, %v868_v0  ;;  %872 = vst.msk [vmem:[#allocation24 + $0x8] sm:$0xff] (!%p2567_p7), %vm870_vm0, %v869_v1 }
 0x1ad   : > { %v874_v3 = vshrl.u32 (!%p2567_p7), %v873_v2, 7  ;;  %v876_v4 = vand.u32 (!%p2567_p7), 127, %v873_v2 }
 0x1af   : > { %vm877_vm2 = vcmp.ge.s32.totalorder (!%p2567_p7), %v874_v3, %v876_v4 }
 0x1b0   : > { %v878_v6 = vsel (!%p2567_p7), %vm877_vm2, 0.0, %v3530_v5 }
 0x1b1   : > { %880 = vst.msk [vmem:[#allocation2] sm:$0xff] (!%p2567_p7), %vm879_vm1, %v878_v6 }
 0x1b3 PF: > { %v4157_v7 = vld [vmem:[#allocation24] sm:$0xff]  ;;  %vm885_vm3 = vcmask 261120   ;;  %v4159_v8 = vld [vmem:[#allocation24 + $0x8] sm:$0xff]  ;;  %v3531_v22 = vmov 0.0   ;;  %vm3532_vm4 = vmmov 0   ;;  %s3533_s20 = smov 96  }
 0x1b4   : > { %v886_v9 = vsel %vm885_vm3, %v4157_v7, 0.0  ;;  %v889_v10 = vsel %vm885_vm3, %v4159_v8, 0.0  ;;  %v2961_v21 = vld [vmem:[%s701_s12] sm:$0xff]   ;;  %2664 = vmatprep.subr.bf16.mxu0 %v3531_v22  ;;  %2672 = vmatprep.subr.bf16.mxu1 %v3531_v22  ;;  %v2962_v23 = vld [vmem:[%s701_s12 + $0x8] sm:$0xff]   ;;  %vm1006_vm5 = vcmask 64512   ;;  %s3534_s21 = smov 64  }
 0x1b5   : > { %887 = vadd.xlane.f32.xlu0 %v886_v9  ;;  %2665 = vmatpush3.bf16.msra.mxu0 %v2961_v21  ;;  %v2568_v32 = vld [vmem:[%s684_s28] ss:$0 sm:$0xff]  ;;  %s3535_s28 = smov 88   ;;  %vm1130_vm6 = vcmask 1043456   ;;  %s3537_s12 = smov 56   ;;  %vm1908_vm7 = vcmask 130048  }
 0x1b6   : > { %2668 = vmatprep.mubr.msk.bf16.mxu0 %vm3532_vm4, %v3531_v22  ;;  %2666 = vmatprep.subr.bf16.mxu0 %v3531_v22  ;;  %v2569_v36 = vld [vmem:[%s692_s25] ss:$0 sm:$0xff]  ;;  %s3536_s25 = smov 120   ;;  %s3539_s19 = smov 112   ;;  %vm1911_vm8 = vcmask 195584   ;;  %vm2190_vm11 = vcmask 523264  }
 0x1b7   : > { %2674 = vmatprep.mubr.msk.bf16.mxu1 %vm3532_vm4, %v3531_v22  ;;  %v2570_v41 = vld [vmem:[%s709_s10] ss:$0 sm:$0xff]  ;;  %s3538_s10 = smov 80   ;;  %s3540_s16 = smov 48  }
 0x1b8   : > { %v4208_v54 = vld [vmem:[#allocation2] sm:$0xff]  ;;  %s3541_s15 = smov 72   ;;  %s3542_s1 = smov 104  }
 0x1b9   : > { %890 = vadd.xlane.f32.xlu0 %v889_v10  ;;  %2667 = vmatpush3.bf16.msra.mxu0 %v2962_v23  ;;  %s4518_s27 = scalar_lea.vmem [#allocation17], %s4107_s14  ;;  %p2872_p2 = scmp.eq.s32.totalorder %s3894_s24, 1 }
 0x1ba   : > { %2678 = vmatprep.subr.bf16.mxu0 %v3531_v22 }
 0x242   : > { %v888_v11 = vpop.xlane.xlu0 %887 }
 0x243   : > { %v893_v12 = vmul.f32 0.03125, %v888_v11 }
 0x245   : > { %v895_v13 = vsub.f32 %v4157_v7, %v893_v12 }
 0x246   : > { %v891_v14 = vpop.xlane.xlu0 %890 }
 0x247   : > { %v894_v15 = vmul.f32 0.03125, %v891_v14  ;;  %v897_v16 = vmul.f32 %v895_v13, %v895_v13 }
 0x249   : > { %v896_v17 = vsub.f32 %v4159_v8, %v894_v15  ;;  %v899_v18 = vsel %vm885_vm3, %v897_v16, 0.0 }
 0x24a   : > { %900 = vadd.xlane.f32.xlu1 %v899_v18 }
 0x24b   : > { %v898_v19 = vmul.f32 %v896_v17, %v896_v17 }
 0x24d   : > { %v902_v20 = vsel %vm885_vm3, %v898_v19, 0.0 }
 0x24e   : > { %903 = vadd.xlane.f32.xlu1 %v902_v20 }
 0x2d7   : > { %v901_v24 = vpop.xlane.xlu1 %900 }
 0x2d8   : > { %v905_v25 = vmul.f32 0.03125, %v901_v24 }
 0x2da   : > { %v907_v26 = vadd.f32 1e-05, %v905_v25 }
 0x2db   : > { %v904_v27 = vpop.xlane.xlu1 %903 }
 0x2dc   : > { %2971 = vrsqrt.f32 %v907_v26  ;;  %v906_v28 = vmul.f32 0.03125, %v904_v27 }
 0x2de   : > { %v908_v29 = vadd.f32 1e-05, %v906_v28 }
 0x2e0   : > { %2973 = vrsqrt.f32 %v908_v29 }
 0x2e6   : > { %v2972_v30 = vpop.eup %2971 }
 0x2e7   : > { %v911_v31 = vmul.f32 %v2972_v30, %v895_v13 }
 0x2e9   : > { %v919_v35 = vmul.f32 %v2568_v32, %v911_v31 }
 0x2ea   : > { %v2974_v33 = vpop.eup %2973 }
 0x2eb   : > { %v912_v34 = vmul.f32 %v2974_v33, %v896_v17  ;;  %v927_v38 = vadd.f32 %v2569_v36, %v919_v35 }
 0x2ed   : > { %v920_v37 = vmul.f32 %v2568_v32, %v912_v34 }
 0x2ef   : > { %v928_v39 = vadd.f32 %v2569_v36, %v920_v37 }
 0x2f1   : > { %v929_v40 = vpack.c.bf16 %v928_v39, %v927_v38 }
 0x2f3   : > { %2669 = vmatmul.mubr.msk.bf16.vlgmr.msra.gmra.mrb[0].mxu0 %vm885_vm3, %v929_v40 }
 0x2f4   : > { %2680 = vmatprep.mubr.msk.bf16.mxu0 %vm3532_vm4, %v3531_v22 }
 0x3c6   : > { %v990_v42 = vpop.f32.mrb[0].mxu0 }
 0x3c7   : > { %v991_v43 = vadd.f32 %v2570_v41, %v990_v42  ;;  %v2670_v44 = vpop.f32.mrb[1].mxu0 }
 0x3c8   : > { %v993_v45 = vpop.f32.mrb[2].mxu0 }
 0x3c9   : > { %v4190_v46 = vpack.c.bf16 %v991_v43, %v991_v43  ;;  %v994_v47 = vadd.f32 %v2570_v41, %v993_v45  ;;  %v2671_v48 = vpop.f32.mrb[3].mxu0 }
 0x3cb   : > { %v4192_v49 = vpack.c.bf16 %v994_v47, %v994_v47  ;;  %1004 = vrot.lane.b32.xlu0 %v4190_v46, %s3533_s20 }
 0x3cd   : > { %1053 = vrot.lane.b32.xlu1 %v4192_v49, %s3533_s20  ;;  %s3543_s20 = smov 40  }
 0x43d   : > { %v1005_v50 = vpop.permute.xlu0 %1004 }
 0x43e   : > { %v1011_v51 = vsel %vm1006_vm5, %v1005_v50, 0 }
 0x43f   : > { %2673 = vmatpush3.bf16.xpose.msra.mxu1 %v1011_v51  ;;  %v1054_v52 = vpop.permute.xlu1 %1053 }
 0x440   : > { %v1059_v53 = vsel %vm1006_vm5, %v1054_v52, 0  ;;  %2684 = vmatprep.subr.bf16.mxu1 %v3531_v22 }
 0x441   : > { %2679 = vmatpush3.bf16.xpose.msra.mxu0 %v1059_v53 }
 0x442   : > { %2690 = vmatprep.subr.bf16.mxu0 %v3531_v22 }
 0x446   : > { %2675 = vmatmul.mubr.msk.bf16.vlgmr.msra.gmra.mrb[0].mxu1 %vm1006_vm5, %v4190_v46 }
 0x447   : > { %2686 = vmatprep.mubr.msk.bf16.mxu1 %vm3532_vm4, %v3531_v22 }
 0x448   : > { %2681 = vmatmul.mubr.msk.bf16.vlgmr.msra.gmra.mrb[4].mxu0 %vm1006_vm5, %v4192_v49 }
 0x449   : > { %2692 = vmatprep.mubr.msk.bf16.mxu0 %vm3532_vm4, %v3531_v22 }
 0x519   : > { %v1047_v55 = vpop.f32.mrb[0].mxu1 }
 0x51a   : > { %v1048_v56 = vadd.f32 %v1047_v55, %v4208_v54  ;;  %v2676_v57 = vpop.f32.mrb[1].mxu1 }
 0x51b   : > { %v1050_v58 = vpop.f32.mrb[2].mxu1  ;;  %v1095_v59 = vpop.f32.mrb[4].mxu0 }
 0x51c   : > { %v1096_v60 = vadd.f32 %v1095_v59, %v4208_v54  ;;  %v2677_v61 = vpop.f32.mrb[3].mxu1  ;;  %v2682_v62 = vpop.f32.mrb[5].mxu0  ;;  %v1101_v63 = vsel %vm1006_vm5, %v1048_v56, -inf }
 0x51d   : > { %1102 = vmax.xlane.f32.xlu1 %v1101_v63  ;;  %v1098_v0 = vpop.f32.mrb[6].mxu0 }
 0x51e   : > { %v2683_v1 = vpop.f32.mrb[7].mxu0  ;;  %v1104_v2 = vsel %vm1006_vm5, %v1096_v60, -inf }
 0x51f   : > { %1105 = vmax.xlane.f32.xlu0 %v1104_v2 }
 0x52e   : > { %1174 = vrot.lane.b32.xlu1 %v4192_v49, %s3534_s21 }
 0x532   : > { %1224 = vrot.lane.b32.xlu1 %v4190_v46, %s3535_s28 }
 0x5aa   : > { %v1103_v3 = vpop.xlane.xlu1 %1102 }
 0x5ab   : > { %v1107_v4 = vsub.f32 %v1048_v56, %v1103_v3 }
 0x5ac   : > { %v1106_v5 = vpop.xlane.xlu0 %1105 }
 0x5ad   : > { %v1109_v6 = vmul.f32 1.442695, %v1107_v4  ;;  %v1108_v9 = vsub.f32 %v1096_v60, %v1106_v5 }
 0x5ae   : > { %v1175_v10 = vpop.permute.xlu1 %1174 }
 0x5af   : > { %2975 = vpow2.f32 %v1109_v6  ;;  %v1111_v11 = vmul.f32 1.442695, %v1108_v9  ;;  %v1180_v12 = vsel %vm1130_vm6, %v1175_v10, 0 }
 0x5b0   : > { %2691 = vmatpush3.bf16.msra.mxu0 %v1180_v12 }
 0x5b1   : > { %2977 = vpow2.f32 %v1111_v11  ;;  %2702 = vmatprep.subr.bf16.mxu0 %v3531_v22 }
 0x5b2   : > { %v1225_v17 = vpop.permute.xlu1 %1224 }
 0x5b3   : > { %v1230_v29 = vsel %vm1006_vm5, %v1225_v17, 0 }
 0x5b9   : > { %v2976_v13 = vpop.eup %2975 }
 0x5ba   : > { %v1113_v14 = vsel %vm1006_vm5, %v2976_v13, 0.0 }
 0x5bb   : > { %v2978_v15 = vpop.eup %2977  ;;  %1114 = vadd.xlane.f32.xlu0 %v1113_v14 }
 0x5bc   : > { %v1116_v16 = vsel %vm1006_vm5, %v2978_v15, 0.0 }
 0x5bd   : > { %1117 = vadd.xlane.f32.xlu1 %v1116_v16 }
 0x5ce   : > { %1274 = vrot.lane.b32.xlu1 %v4192_v49, %s3535_s28  ;;  %s3545_s28 = smov 16  }
 0x5d1   : > { %1125 = vrot.lane.b32.xlu0 %v4190_v46, %s3534_s21  ;;  %s3544_s21 = smov 8  }
 0x5d2   : > { %1272 = vrot.lane.b32.xlu1 %v4192_v49, %s3536_s25 }
 0x5d5   : > { %1222 = vrot.lane.b32.xlu0 %v4190_v46, %s3536_s25  ;;  %s3546_s25 = smov 24  }
 0x648   : > { %v1115_v18 = vpop.xlane.xlu0 %1114 }
 0x649   : > { %2979 = vrcp.f32 %v1115_v18 }
 0x64a   : > { %v1118_v19 = vpop.xlane.xlu1 %1117 }
 0x64b   : > { %2981 = vrcp.f32 %v1118_v19 }
 0x64c   : > { %v1126_v20 = vpop.permute.xlu0 %1125 }
 0x64d   : > { %v1132_v21 = vsel %vm1130_vm6, %v1126_v20, 0 }
 0x64e   : > { %2685 = vmatpush3.bf16.msra.mxu1 %v1132_v21  ;;  %v1275_v28 = vpop.permute.xlu1 %1274 }
 0x64f   : > { %2696 = vmatprep.subr.bf16.mxu1 %v3531_v22  ;;  %v1280_v31 = vsel %vm1006_vm5, %v1275_v28, 0 }
 0x650   : > { %v1223_v32 = vpop.permute.xlu0 %1222 }
 0x652   : > { %v1273_v33 = vpop.permute.xlu1 %1272 }
 0x653   : > { %v2980_v23 = vpop.eup %2979 }
 0x654   : > { %v1121_v24 = vmul.f32 %v2980_v23, %v2976_v13 }
 0x655   : > { %v2982_v25 = vpop.eup %2981 }
 0x656   : > { %v1122_v26 = vmul.f32 %v2982_v25, %v2978_v15  ;;  %v1123_v27 = vpack.c.bf16 %v1121_v24, %v1121_v24 }
 0x658   : > { %2687 = vmatmul.mubr.msk.bf16.vlgmr.msra.gmra.mrb[4].mxu1 %vm1006_vm5, %v1123_v27  ;;  %v1124_v30 = vpack.c.bf16 %v1122_v26, %v1122_v26 }
 0x659   : > { %2697 = vmatpush3.bf16.xpose.msra.mxu1 %v1230_v29  ;;  %2698 = vmatprep.mubr.msk.bf16.mxu1 %vm3532_vm4, %v3531_v22 }
 0x65a   : > { %2693 = vmatmul.mubr.msk.bf16.vlgmr.msra.gmra.mrb[8].mxu0 %vm1006_vm5, %v1124_v30  ;;  %2708 = vmatprep.subr.bf16.mxu1 %v3531_v22 }
 0x65b   : > { %2703 = vmatpush3.bf16.xpose.msra.mxu0 %v1280_v31  ;;  %2704 = vmatprep.mubr.msk.bf16.mxu0 %vm3532_vm4, %v3531_v22 }
 0x65c   : > { %2714 = vmatprep.subr.bf16.mxu0 %v3531_v22 }
 0x660   : > { %2699 = vmatmul.mubr.msk.bf16.vlgmr.msra.gmra.mrb[8].mxu1 %vm1006_vm5, %v1223_v32 }
 0x661   : > { %2710 = vmatprep.mubr.msk.bf16.mxu1 %vm3532_vm4, %v3531_v22 }
 0x662   : > { %2705 = vmatmul.mubr.msk.bf16.vlgmr.msra.gmra.mrb[12].mxu0 %vm1006_vm5, %v1273_v33 }
 0x663   : > { %2716 = vmatprep.mubr.msk.bf16.mxu0 %vm3532_vm4, %v3531_v22 }
 0x72b   : > { %v4242_v34 = vpop.f32.mrb[4].mxu1 }
 0x72c   : > { %v2688_v35 = vpop.f32.mrb[5].mxu1 }
 0x72d   : > { %v1171_v36 = vpop.f32.mrb[6].mxu1  ;;  %v4244_v37 = vpop.f32.mrb[8].mxu0 }
 0x72e   : > { %v2689_v38 = vpop.f32.mrb[7].mxu1  ;;  %v2694_v39 = vpop.f32.mrb[9].mxu0 }
 0x72f   : > { %v1219_v40 = vpop.f32.mrb[10].mxu0 }
 0x730   : > { %v2695_v41 = vpop.f32.mrb[11].mxu0 }
 0x733   : > { %v1266_v42 = vpop.f32.mrb[8].mxu1 }
 0x734   : > { %v1267_v43 = vadd.f32 %v1266_v42, %v4208_v54  ;;  %v2700_v44 = vpop.f32.mrb[9].mxu1 }
 0x735   : > { %v1269_v45 = vpop.f32.mrb[10].mxu1  ;;  %v1316_v47 = vpop.f32.mrb[12].mxu0 }
 0x736   : > { %v1317_v48 = vadd.f32 %v1316_v47, %v4208_v54  ;;  %v2701_v50 = vpop.f32.mrb[11].mxu1  ;;  %v2706_v51 = vpop.f32.mrb[13].mxu0  ;;  %v1322_v52 = vsel %vm1006_vm5, %v1267_v43, -inf }
 0x737   : > { %1323 = vmax.xlane.f32.xlu0 %v1322_v52  ;;  %v1319_v53 = vpop.f32.mrb[14].mxu0 }
 0x738   : > { %v2707_v55 = vpop.f32.mrb[15].mxu0  ;;  %v1325_v56 = vsel %vm1006_vm5, %v1317_v48, -inf }
 0x739   : > { %1326 = vmax.xlane.f32.xlu1 %v1325_v56 }
 0x74a   : > { %1394 = vrot.lane.b32.xlu1 %v4192_v49, %s3537_s12 }
 0x74e   : > { %1444 = vrot.lane.b32.xlu1 %v4190_v46, %s3538_s10 }
 0x752   : > { %1494 = vrot.lane.b32.xlu1 %v4192_v49, %s3538_s10 }
 0x756   : > { %1492 = vrot.lane.b32.xlu1 %v4192_v49, %s3539_s19 }
 0x7c4   : > { %v1324_v57 = vpop.xlane.xlu0 %1323 }
 0x7c5   : > { %v1328_v58 = vsub.f32 %v1267_v43, %v1324_v57 }
 0x7c6   : > { %v1327_v59 = vpop.xlane.xlu1 %1326 }
 0x7c7   : > { %v1330_v60 = vmul.f32 1.442695, %v1328_v58  ;;  %v1329_v61 = vsub.f32 %v1317_v48, %v1327_v59 }
 0x7c9   : > { %2983 = vpow2.f32 %v1330_v60  ;;  %v1332_v62 = vmul.f32 1.442695, %v1329_v61 }
 0x7ca   : > { %v1395_v63 = vpop.permute.xlu1 %1394 }
 0x7cb   : > { %2985 = vpow2.f32 %v1332_v62  ;;  %v1400_v0 = vsel %vm1130_vm6, %v1395_v63, 0 }
 0x7cc   : > { %2715 = vmatpush3.bf16.msra.mxu0 %v1400_v0 }
 0x7cd   : > { %2726 = vmatprep.subr.bf16.mxu0 %v3531_v22 }
 0x7ce   : > { %v1445_v12 = vpop.permute.xlu1 %1444 }
 0x7cf   : > { %v1450_v18 = vsel %vm1006_vm5, %v1445_v12, 0 }
 0x7d2   : > { %v1495_v17 = vpop.permute.xlu1 %1494 }
 0x7d3   : > { %v2984_v1 = vpop.eup %2983  ;;  %v1500_v20 = vsel %vm1006_vm5, %v1495_v17, 0 }
 0x7d4   : > { %v1334_v2 = vsel %vm1006_vm5, %v2984_v1, 0.0 }
 0x7d5   : > { %v2986_v3 = vpop.eup %2985  ;;  %1335 = vadd.xlane.f32.xlu0 %v1334_v2 }
 0x7d6   : > { %v1337_v4 = vsel %vm1006_vm5, %v2986_v3, 0.0  ;;  %v1493_v23 = vpop.permute.xlu1 %1492 }
 0x7d9   : > { %1338 = vadd.xlane.f32.xlu0 %v1337_v4 }
 0x7ef   : > { %1346 = vrot.lane.b32.xlu0 %v4190_v46, %s3537_s12 }
 0x7f3   : > { %1442 = vrot.lane.b32.xlu0 %v4190_v46, %s3539_s19 }
 0x862   : > { %v1336_v5 = vpop.xlane.xlu0 %1335 }
 0x863   : > { %2987 = vrcp.f32 %v1336_v5 }
 0x866   : > { %v1339_v6 = vpop.xlane.xlu0 %1338 }
 0x867   : > { %2989 = vrcp.f32 %v1339_v6 }
 0x86a   : > { %v1347_v9 = vpop.permute.xlu0 %1346 }
 0x86b   : > { %v1352_v10 = vsel %vm1130_vm6, %v1347_v9, 0 }
 0x86c   : > { %2709 = vmatpush3.bf16.msra.mxu1 %v1352_v10 }
 0x86d   : > { %v2988_v11 = vpop.eup %2987  ;;  %2720 = vmatprep.subr.bf16.mxu1 %v3531_v22 }
 0x86e   : > { %v1342_v13 = vmul.f32 %v2988_v11, %v2984_v1  ;;  %v1443_v21 = vpop.permute.xlu0 %1442 }
 0x870   : > { %v1344_v14 = vpack.c.bf16 %v1342_v13, %v1342_v13 }
 0x871   : > { %v2990_v15 = vpop.eup %2989 }
 0x872   : > { %v1343_v16 = vmul.f32 %v2990_v15, %v2986_v3  ;;  %2711 = vmatmul.mubr.msk.bf16.vlgmr.msra.gmra.mrb[12].mxu1 %vm1006_vm5, %v1344_v14 }
 0x873   : > { %2722 = vmatprep.mubr.msk.bf16.mxu1 %vm3532_vm4, %v3531_v22 }
 0x874   : > { %v1345_v19 = vpack.c.bf16 %v1343_v16, %v1343_v16 }
 0x875   : > { %2721 = vmatpush3.bf16.xpose.msra.mxu1 %v1450_v18 }
 0x876   : > { %2717 = vmatmul.mubr.msk.bf16.vlgmr.msra.gmra.mrb[16].mxu0 %vm1006_vm5, %v1345_v19  ;;  %2732 = vmatprep.subr.bf16.mxu1 %v3531_v22 }
 0x877   : > { %2727 = vmatpush3.bf16.xpose.msra.mxu0 %v1500_v20  ;;  %2728 = vmatprep.mubr.msk.bf16.mxu0 %vm3532_vm4, %v3531_v22 }
 0x878   : > { %2738 = vmatprep.subr.bf16.mxu0 %v3531_v22 }
 0x87c   : > { %2723 = vmatmul.mubr.msk.bf16.vlgmr.msra.gmra.mrb[16].mxu1 %vm1006_vm5, %v1443_v21 }
 0x87d   : > { %2734 = vmatprep.mubr.msk.bf16.mxu1 %vm3532_vm4, %v3531_v22 }
 0x87e   : > { %2729 = vmatmul.mubr.msk.bf16.vlgmr.msra.gmra.mrb[20].mxu0 %vm1006_vm5, %v1493_v23 }
 0x87f   : > { %2740 = vmatprep.mubr.msk.bf16.mxu0 %vm3532_vm4, %v3531_v22 }
 0x945   : > { %v4278_v24 = vpop.f32.mrb[12].mxu1 }
 0x946   : > { %v2712_v25 = vpop.f32.mrb[13].mxu1 }
 0x947   : > { %v1391_v26 = vpop.f32.mrb[14].mxu1 }
 0x948   : > { %v2713_v27 = vpop.f32.mrb[15].mxu1 }
 0x949   : > { %v4280_v28 = vpop.f32.mrb[16].mxu0 }
 0x94a   : > { %v2946_v29 = vpack.i.bf16 %v4280_v28, %v4278_v24  ;;  %v2718_v30 = vpop.f32.mrb[17].mxu0 }
 0x94b   : > { %v1439_v31 = vpop.f32.mrb[18].mxu0 }
 0x94c   : > { %v2719_v32 = vpop.f32.mrb[19].mxu0 }
 0x94f   : > { %v1486_v33 = vpop.f32.mrb[16].mxu1 }
 0x950   : > { %v1487_v35 = vadd.f32 %v1486_v33, %v4208_v54  ;;  %v2724_v36 = vpop.f32.mrb[17].mxu1 }
 0x951   : > { %v1489_v38 = vpop.f32.mrb[18].mxu1  ;;  %v1536_v39 = vpop.f32.mrb[20].mxu0 }
 0x952   : > { %v1537_v40 = vadd.f32 %v1536_v39, %v4208_v54  ;;  %v2725_v41 = vpop.f32.mrb[19].mxu1  ;;  %v2730_v42 = vpop.f32.mrb[21].mxu0  ;;  %v1542_v43 = vsel %vm1006_vm5, %v1487_v35, -inf }
 0x953   : > { %1543 = vmax.xlane.f32.xlu0 %v1542_v43  ;;  %v1539_v44 = vpop.f32.mrb[22].mxu0 }
 0x954   : > { %v2731_v45 = vpop.f32.mrb[23].mxu0  ;;  %v1545_v47 = vsel %vm1006_vm5, %v1537_v40, -inf }
 0x955   : > { %1546 = vmax.xlane.f32.xlu1 %v1545_v47 }
 0x966   : > { %1614 = vrot.lane.b32.xlu1 %v4192_v49, %s3540_s16 }
 0x96a   : > { %1664 = vrot.lane.b32.xlu1 %v4190_v46, %s3541_s15 }
 0x96e   : > { %1714 = vrot.lane.b32.xlu1 %v4192_v49, %s3541_s15 }
 0x972   : > { %1712 = vrot.lane.b32.xlu1 %v4192_v49, %s3542_s1 }
 0x9e0   : > { %v1544_v48 = vpop.xlane.xlu0 %1543 }
 0x9e1   : > { %v1548_v50 = vsub.f32 %v1487_v35, %v1544_v48 }
 0x9e2   : > { %v1547_v51 = vpop.xlane.xlu1 %1546 }
 0x9e3   : > { %v1550_v52 = vmul.f32 1.442695, %v1548_v50  ;;  %v1549_v53 = vsub.f32 %v1537_v40, %v1547_v51 }
 0x9e5   : > { %2991 = vpow2.f32 %v1550_v52  ;;  %v1552_v55 = vmul.f32 1.442695, %v1549_v53 }
 0x9e6   : > { %v1615_v56 = vpop.permute.xlu1 %1614 }
 0x9e7   : > { %2993 = vpow2.f32 %v1552_v55  ;;  %v1620_v57 = vsel %vm1130_vm6, %v1615_v56, 0 }
 0x9e8   : > { %2739 = vmatpush3.bf16.msra.mxu0 %v1620_v57 }
 0x9e9   : > { %2750 = vmatprep.subr.bf16.mxu0 %v3531_v22 }
 0x9ea   : > { %v1665_v3 = vpop.permute.xlu1 %1664 }
 0x9eb   : > { %v1670_v11 = vsel %vm1006_vm5, %v1665_v3, 0 }
 0x9ee   : > { %v1715_v10 = vpop.permute.xlu1 %1714 }
 0x9ef   : > { %v2992_v58 = vpop.eup %2991  ;;  %v1720_v13 = vsel %vm1006_vm5, %v1715_v10, 0 }
 0x9f0   : > { %v1554_v59 = vsel %vm1006_vm5, %v2992_v58, 0.0 }
 0x9f1   : > { %v2994_v60 = vpop.eup %2993  ;;  %1555 = vadd.xlane.f32.xlu0 %v1554_v59 }
 0x9f2   : > { %v1557_v61 = vsel %vm1006_vm5, %v2994_v60, 0.0  ;;  %v1713_v15 = vpop.permute.xlu1 %1712 }
 0x9f5   : > { %1558 = vadd.xlane.f32.xlu0 %v1557_v61 }
 0xa0b   : > { %1566 = vrot.lane.b32.xlu0 %v4190_v46, %s3540_s16 }
 0xa0f   : > { %1662 = vrot.lane.b32.xlu0 %v4190_v46, %s3542_s1 }
 0xa7e   : > { %v1556_v62 = vpop.xlane.xlu0 %1555 }
 0xa7f   : > { %2995 = vrcp.f32 %v1556_v62  ;;  %v2963_v62 = vld [vmem:[%s718_s8] sm:$0xff]  }
 0xa82   : > { %v1559_v63 = vpop.xlane.xlu0 %1558 }
 0xa83   : > { %2997 = vrcp.f32 %v1559_v63  ;;  %v2964_v63 = vld [vmem:[%s718_s8 + $0x8] sm:$0xff]   ;;  %s3547_s8 = smov [#allocation24]  }
 0xa86   : > { %v1567_v0 = vpop.permute.xlu0 %1566 }
 0xa87   : > { %v1572_v1 = vsel %vm1130_vm6, %v1567_v0, 0 }
 0xa88   : > { %2733 = vmatpush3.bf16.msra.mxu1 %v1572_v1 }
 0xa89   : > { %v2996_v2 = vpop.eup %2995  ;;  %2744 = vmatprep.subr.bf16.mxu1 %v3531_v22 }
 0xa8a   : > { %v1562_v4 = vmul.f32 %v2996_v2, %v2992_v58  ;;  %v1663_v14 = vpop.permute.xlu0 %1662 }
 0xa8c   : > { %v1564_v5 = vpack.c.bf16 %v1562_v4, %v1562_v4 }
 0xa8d   : > { %v2998_v6 = vpop.eup %2997 }
 0xa8e   : > { %v1563_v9 = vmul.f32 %v2998_v6, %v2994_v60  ;;  %2735 = vmatmul.mubr.msk.bf16.vlgmr.msra.gmra.mrb[20].mxu1 %vm1006_vm5, %v1564_v5 }
 0xa8f   : > { %2746 = vmatprep.mubr.msk.bf16.mxu1 %vm3532_vm4, %v3531_v22 }
 0xa90   : > { %v1565_v12 = vpack.c.bf16 %v1563_v9, %v1563_v9 }
 0xa91   : > { %2745 = vmatpush3.bf16.xpose.msra.mxu1 %v1670_v11 }
 0xa92   : > { %2741 = vmatmul.mubr.msk.bf16.vlgmr.msra.gmra.mrb[24].mxu0 %vm1006_vm5, %v1565_v12  ;;  %2756 = vmatprep.subr.bf16.mxu1 %v3531_v22 }
 0xa93   : > { %2751 = vmatpush3.bf16.xpose.msra.mxu0 %v1720_v13  ;;  %2752 = vmatprep.mubr.msk.bf16.mxu0 %vm3532_vm4, %v3531_v22 }
 0xa94   : > { %2762 = vmatprep.subr.bf16.mxu0 %v3531_v22 }
 0xa98   : > { %2747 = vmatmul.mubr.msk.bf16.vlgmr.msra.gmra.mrb[24].mxu1 %vm1006_vm5, %v1663_v14 }
 0xa99   : > { %2758 = vmatprep.mubr.msk.bf16.mxu1 %vm3532_vm4, %v3531_v22 }
 0xa9a   : > { %2753 = vmatmul.mubr.msk.bf16.vlgmr.msra.gmra.mrb[28].mxu0 %vm1006_vm5, %v1713_v15 }
 0xa9b   : > { %2764 = vmatprep.mubr.msk.bf16.mxu0 %vm3532_vm4, %v3531_v22 }
 0xb61   : > { %v1608_v16 = vpop.f32.mrb[20].mxu1 }
 0xb62   : > { %v2736_v17 = vpop.f32.mrb[21].mxu1 }
 0xb63   : > { %v1611_v18 = vpop.f32.mrb[22].mxu1 }
 0xb64   : > { %v2737_v19 = vpop.f32.mrb[23].mxu1 }
 0xb65   : > { %v1656_v20 = vpop.f32.mrb[24].mxu0 }
 0xb66   : > { %v2951_v21 = vpack.i.bf16 %v1656_v20, %v1608_v16  ;;  %v2742_v23 = vpop.f32.mrb[25].mxu0 }
 0xb67   : > { %v1659_v25 = vpop.f32.mrb[26].mxu0 }
 0xb68   : > { %v2743_v26 = vpop.f32.mrb[27].mxu0 }
 0xb6b   : > { %v1706_v27 = vpop.f32.mrb[24].mxu1 }
 0xb6c   : > { %v1707_v30 = vadd.f32 %v1706_v27, %v4208_v54  ;;  %v2748_v31 = vpop.f32.mrb[25].mxu1 }
 0xb6d   : > { %v1709_v32 = vpop.f32.mrb[26].mxu1  ;;  %v1756_v33 = vpop.f32.mrb[28].mxu0  ;;  %v2592_v31 = vld [vmem:[%s726_s13] ss:$0 sm:$0xff]  ;;  %s2248_s13 = sshll.u32 %s3547_s8, 4  ;;  %s2249_s13 = int_to_ptr.vmem [resolvable:$true] %s2248_s13 }
 0xb6e   : > { %v1757_v35 = vadd.f32 %v1756_v33, %v4208_v54  ;;  %v2749_v36 = vpop.f32.mrb[27].mxu1  ;;  %v2754_v38 = vpop.f32.mrb[29].mxu0  ;;  %v1762_v39 = vsel %vm1006_vm5, %v1707_v30, -inf  ;;  %s3407_s14 = scalar_lea.vmem %s2249_s13, 256  ;;  %p3414_p4 = scmp.lt.s32.totalorder %s2249_s13, %s2249_s13 }
 0xb6f   : > { %1763 = vmax.xlane.f32.xlu0 %v1762_v39  ;;  %v1759_v40 = vpop.f32.mrb[30].mxu0  ;;  %p3408_p5 = scmp.ne.s32.totalorder %s2249_s13, %s3407_s14  ;;  %p3415_p13 = scmp.lt.s32.totalorder %s3407_s14, %s3407_s14 }
 0xb70   : > { %v2755_v41 = vpop.f32.mrb[31].mxu0  ;;  %v1765_v42 = vsel %vm1006_vm5, %v1757_v35, -inf }
 0xb71   : > { %1766 = vmax.xlane.f32.xlu1 %v1765_v42  ;;  %p3409_p10 = pnand %p3408_p5, %p2872_p2  ;;  %p3416_p8 = por %p3415_p13, %p3414_p4 }
 0xb73   : > { %p3410_p1 = pneg %p3409_p10 }
 0xb75   : > { %p3417_p6 = pnand %p3416_p8, %p3410_p1 }
 0xb82   : > { %1834 = vrot.lane.b32.xlu1 %v4192_v49, %s3543_s20 }
 0xb86   : > { %2947 = vrot.lane.b32.xlu1 %v2946_v29, %s3544_s21 }
 0xb8a   : > { %2952 = vrot.lane.b32.xlu1 %v2951_v21, %s3545_s28 }
 0xbfc   : > { %v1764_v54 = vpop.xlane.xlu0 %1763 }
 0xbfd   : > { %v1768_v43 = vsub.f32 %v1707_v30, %v1764_v54 }
 0xbfe   : > { %v1767_v44 = vpop.xlane.xlu1 %1766 }
 0xbff   : > { %v1770_v45 = vmul.f32 1.442695, %v1768_v43  ;;  %v1769_v47 = vsub.f32 %v1757_v35, %v1767_v44 }
 0xc01   : > { %2999 = vpow2.f32 %v1770_v45  ;;  %v1772_v48 = vmul.f32 1.442695, %v1769_v47 }
 0xc02   : > { %v1835_v50 = vpop.permute.xlu1 %1834 }
 0xc03   : > { %3001 = vpow2.f32 %v1772_v48  ;;  %v1840_v51 = vsel %vm1130_vm6, %v1835_v50, 0 }
 0xc04   : > { %2763 = vmatpush3.bf16.msra.mxu0 %v1840_v51  ;;  %v2965_v51 = vld [vmem:[%s751_s0] sm:$0xff]  }
 0xc05   : > { %2776 = vmatprep.subr.bf16.mxu0 %v3531_v22 }
 0xc06   : > { %v2948_v11 = vpop.permute.xlu1 %2947 }
 0xc07   : > { %v2950_v13 = vunpack.i.h.bf16 %v2948_v11  ;;  %v2949_v14 = vunpack.i.l.bf16 %v2948_v11 }
 0xc09   : > { %v1907_v18 = vsel %vm1006_vm5, %v4244_v37, %v2950_v13  ;;  %v1906_v19 = vsel %vm1006_vm5, %v4242_v34, %v2949_v14 }
 0xc0a   : > { %v2953_v12 = vpop.permute.xlu1 %2952 }
 0xc0b   : > { %v3000_v49 = vpop.eup %2999  ;;  %v2955_v15 = vunpack.i.h.bf16 %v2953_v12  ;;  %v2954_v16 = vunpack.i.l.bf16 %v2953_v12 }
 0xc0c   : > { %v1774_v24 = vsel %vm1006_vm5, %v3000_v49, 0.0 }
 0xc0d   : > { %v3002_v28 = vpop.eup %3001  ;;  %1775 = vadd.xlane.f32.xlu0 %v1774_v24  ;;  %v1909_v23 = vsel %vm1908_vm7, %v1906_v19, %v2954_v16  ;;  %v1910_v25 = vsel %vm1908_vm7, %v1907_v18, %v2955_v15 }
 0xc0e   : > { %v1777_v29 = vsel %vm1006_vm5, %v3002_v28, 0.0 }
 0xc11   : > { %1778 = vadd.xlane.f32.xlu0 %v1777_v29 }
 0xc27   : > { %1786 = vrot.lane.b32.xlu0 %v4190_v46, %s3543_s20 }
 0xc9a   : > { %v1776_v52 = vpop.xlane.xlu0 %1775 }
 0xc9b   : > { %3003 = vrcp.f32 %v1776_v52 }
 0xc9e   : > { %v1779_v53 = vpop.xlane.xlu0 %1778 }
 0xc9f   : > { %3005 = vrcp.f32 %v1779_v53 }
 0xca2   : > { %v1787_v55 = vpop.permute.xlu0 %1786 }
 0xca3   : > { %v1792_v56 = vsel %vm1130_vm6, %v1787_v55, 0 }
 0xca4   : > { %2757 = vmatpush3.bf16.msra.mxu1 %v1792_v56 }
 0xca5   : > { %v3004_v57 = vpop.eup %3003  ;;  %2768 = vmatprep.subr.bf16.mxu1 %v3531_v22 }
 0xca6   : > { %v1782_v58 = vmul.f32 %v3004_v57, %v3000_v49  ;;  %v2966_v49 = vld [vmem:[%s751_s0 + $0x8] sm:$0xff]  }
 0xca8   : > { %v1784_v59 = vpack.c.bf16 %v1782_v58, %v1782_v58  ;;  %v2596_v58 = vld [vmem:[%s734_s18] ss:$0 sm:$0xff] }
 0xca9   : > { %v3006_v60 = vpop.eup %3005 }
 0xcaa   : > { %v1783_v61 = vmul.f32 %v3006_v60, %v3002_v28  ;;  %2759 = vmatmul.mubr.msk.bf16.vlgmr.msra.gmra.mrb[28].mxu1 %vm1006_vm5, %v1784_v59 }
 0xcab   : > { %2772 = vmatprep.mubr.msk.bf16.mxu1 %vm3532_vm4, %v3531_v22  ;;  %2769 = vmatpush3.bf16.msra.mxu1 %v2963_v62 }
 0xcac   : > { %v1785_v46 = vpack.c.bf16 %v1783_v61, %v1783_v61  ;;  %2770 = vmatprep.subr.bf16.mxu1 %v3531_v22 }
 0xcae   : > { %2765 = vmatmul.mubr.msk.bf16.vlgmr.msra.gmra.mrb[32].mxu0 %vm1006_vm5, %v1785_v46  ;;  %v2597_v46 = vld [vmem:[%s4518_s27] ss:$0 sm:$0xff] }
 0xcaf   : > { %2780 = vmatprep.mubr.msk.bf16.mxu0 %vm3532_vm4, %v3531_v22  ;;  %2771 = vmatpush3.bf16.msra.mxu1 %v2964_v63 }
 0xcb0   : > { %2784 = vmatprep.subr.bf16.mxu1 %v3531_v22  ;;  %2777 = vmatpush3.bf16.msra.mxu0 %v2965_v51 }
 0xcb1   : > { %2778 = vmatprep.subr.bf16.mxu0 %v3531_v22 }
 0xcb4   : > { %2779 = vmatpush3.bf16.msra.mxu0 %v2966_v49 }
 0xd7d   : > { %v1828_v0 = vpop.f32.mrb[28].mxu1 }
 0xd7e   : > { %v2760_v1 = vpop.f32.mrb[29].mxu1 }
 0xd7f   : > { %v1831_v2 = vpop.f32.mrb[30].mxu1 }
 0xd80   : > { %v2761_v3 = vpop.f32.mrb[31].mxu1  ;;  %v2967_v2 = vld [vmem:[%s4149_s5] sm:$0xff]  }
 0xd81   : > { %v1876_v4 = vpop.f32.mrb[32].mxu0  ;;  %v2968_v3 = vld [vmem:[%s4149_s5 + $0x8] sm:$0xff]  }
 0xd82   : > { %v2956_v5 = vpack.i.bf16 %v1876_v4, %v1828_v0  ;;  %v2766_v6 = vpop.f32.mrb[33].mxu0  ;;  %v2969_v4 = vld [vmem:[%s4149_s5 + $0x10] sm:$0xff]  }
 0xd83   : > { %v1879_v9 = vpop.f32.mrb[34].mxu0  ;;  %v2598_v6 = vld [vmem:[%s759_s17] ss:$0 sm:$0xff] }
 0xd84   : > { %2957 = vrot.lane.b32.xlu0 %v2956_v5, %s3546_s25  ;;  %v2767_v10 = vpop.f32.mrb[35].mxu0  ;;  %v2970_v5 = vld [vmem:[%s4149_s5 + $0x18] sm:$0xff]  }
 0xdf6   : > { %v2958_v17 = vpop.permute.xlu0 %2957 }
 0xdf7   : > { %v2960_v20 = vunpack.i.h.bf16 %v2958_v17  ;;  %v2959_v21 = vunpack.i.l.bf16 %v2958_v17 }
 0xdf9   : > { %v1913_v26 = vsel %vm1911_vm8, %v1910_v25, %v2960_v20  ;;  %v1912_v27 = vsel %vm1911_vm8, %v1909_v23, %v2959_v21 }
 0xdfa   : > { %v1914_v30 = vpack.c.bf16 %v1913_v26, %v1912_v27 }
 0xdfc   : > { %2773 = vmatmul.mubr.msk.bf16.vlgmr.msra.gmra.mrb[32].mxu1 %vm885_vm3, %v1914_v30 }
 0xdfd   : > { %2792 = vmatprep.mubr.msk.bf16.mxu1 %vm3532_vm4, %v3531_v22  ;;  %2785 = vmatpush3.bf16.msra.mxu1 %v2967_v2  ;;  %v2602_v2 = vld [vmem:[%s776_s3] ss:$0 sm:$0xff] }
 0xdfe   : > { %2786 = vmatprep.subr.bf16.mxu1 %v3531_v22 }
 0xe01   : > { %2787 = vmatpush3.bf16.msra.mxu1 %v2968_v3 }
 0xe02   : > { %2788 = vmatprep.subr.bf16.mxu1 %v3531_v22 }
 0xe05   : > { %2789 = vmatpush3.bf16.msra.mxu1 %v2969_v4 }
 0xe06   : > { %2790 = vmatprep.subr.bf16.mxu1 %v3531_v22 }
 0xe09   : > { %2791 = vmatpush3.bf16.msra.mxu1 %v2970_v5 }
 0xecf   : > { %v1975_v32 = vpop.f32.mrb[32].mxu1 }
 0xed0   : > { %v1976_v33 = vadd.f32 %v2592_v31, %v1975_v32  ;;  %v2774_v37 = vpop.f32.mrb[33].mxu1 }
 0xed1   : > { %v1978_v35 = vpop.f32.mrb[34].mxu1 }
 0xed2   : > { %v4354_v34 = vadd.f32 %v1976_v33, %v4157_v7  ;;  %v1979_v36 = vadd.f32 %v2592_v31, %v1978_v35  ;;  %v2775_v38 = vpop.f32.mrb[35].mxu1 }
 0xed4   : > { %v4357_v39 = vadd.f32 %v1979_v36, %v4159_v8  ;;  %v1986_v40 = vsel %vm885_vm3, %v4354_v34, 0.0 }
 0xed5   : > { %1987 = vadd.xlane.f32.xlu1 %v1986_v40 }
 0xed6   : > { %v1989_v41 = vsel %vm885_vm3, %v4357_v39, 0.0 }
 0xed7   : > { %1990 = vadd.xlane.f32.xlu0 %v1989_v41 }
 0xf62   : > { %v1988_v42 = vpop.xlane.xlu1 %1987 }
 0xf63   : > { %v1992_v54 = vmul.f32 0.03125, %v1988_v42 }
 0xf64   : > { %v1991_v43 = vpop.xlane.xlu0 %1990 }
 0xf65   : > { %v1994_v7 = vsub.f32 %v4354_v34, %v1992_v54  ;;  %v1993_v44 = vmul.f32 0.03125, %v1991_v43 }
 0xf67   : > { %v1995_v45 = vsub.f32 %v4357_v39, %v1993_v44  ;;  %v1996_v8 = vmul.f32 %v1994_v7, %v1994_v7 }
 0xf69   : > { %v1998_v47 = vsel %vm885_vm3, %v1996_v8, 0.0  ;;  %v1997_v48 = vmul.f32 %v1995_v45, %v1995_v45 }
 0xf6a   : > { %1999 = vadd.xlane.f32.xlu0 %v1998_v47 }
 0xf6b   : > { %v2001_v50 = vsel %vm885_vm3, %v1997_v48, 0.0 }
 0xf6e   : > { %2002 = vadd.xlane.f32.xlu0 %v2001_v50 }
 0xff7   : > { %v2000_v24 = vpop.xlane.xlu0 %1999 }
 0xff8   : > { %v2004_v28 = vmul.f32 0.03125, %v2000_v24 }
 0xffa   : > { %v2006_v29 = vadd.f32 1e-05, %v2004_v28 }
 0xffb   : > { %v2003_v52 = vpop.xlane.xlu0 %2002 }
 0xffc   : > { %3007 = vrsqrt.f32 %v2006_v29  ;;  %v2005_v53 = vmul.f32 0.03125, %v2003_v52 }
 0xffe   : > { %v2007_v55 = vadd.f32 1e-05, %v2005_v53 }
0x1000   : > { %3009 = vrsqrt.f32 %v2007_v55 }
0x1006   : > { %v3008_v56 = vpop.eup %3007 }
0x1007   : > { %v2010_v57 = vmul.f32 %v3008_v56, %v1994_v7 }
0x1009   : > { %v2018_v60 = vmul.f32 %v2596_v58, %v2010_v57 }
0x100a   : > { %v3010_v59 = vpop.eup %3009 }
0x100b   : > { %v2011_v61 = vmul.f32 %v3010_v59, %v1995_v45  ;;  %v2026_v63 = vadd.f32 %v2597_v46, %v2018_v60 }
0x100d   : > { %v2019_v62 = vmul.f32 %v2596_v58, %v2011_v61 }
0x100f   : > { %v2027_v0 = vadd.f32 %v2597_v46, %v2019_v62 }
0x1011   : > { %v2028_v1 = vpack.c.bf16 %v2027_v0, %v2026_v63 }
0x1013   : > { %2781 = vmatmul.mubr.msk.bf16.vlgmr.msra.gmra.mrb[36].mxu0 %vm885_vm3, %v2028_v1 }
0x10e6   : > { %v2089_v9 = vpop.f32.mrb[36].mxu0 }
0x10e7   : > { %v2090_v10 = vadd.f32 %v2598_v6, %v2089_v9  ;;  %v2782_v11 = vpop.f32.mrb[37].mxu0 }
0x10e8   : > { %v2092_v12 = vpop.f32.mrb[38].mxu0 }
0x10e9   : > { %v2096_v13 = vmul.f32 0.70710677, %v2090_v10  ;;  %v2093_v14 = vadd.f32 %v2598_v6, %v2092_v12  ;;  %v2783_v15 = vpop.f32.mrb[39].mxu0  ;;  %v2144_v61 = vmul.f32 0.5, %v2090_v10 }
0x10eb   : > { %v2098_v16 = vand.u32 2147483647, %v2096_v13  ;;  %v2097_v17 = vmul.f32 0.70710677, %v2093_v14  ;;  %vm2138_vm9 = vcmp.lt.f32.partialorder %v2096_v13, 0.0  ;;  %v2145_v46 = vmul.f32 0.5, %v2093_v14 }
0x10ed   : > { %v2100_v18 = vmul.f32 0.3275911, %v2098_v16  ;;  %v2099_v19 = vand.u32 2147483647, %v2097_v17  ;;  %v2126_v22 = vsub.f32 0.0, %v2098_v16  ;;  %vm2139_vm10 = vcmp.lt.f32.partialorder %v2097_v17, 0.0 }
0x10ef   : > { %v2102_v20 = vadd.f32 1.0, %v2100_v18  ;;  %v2101_v21 = vmul.f32 0.3275911, %v2099_v19  ;;  %v2127_v25 = vsub.f32 0.0, %v2099_v19  ;;  %v2128_v27 = vmul.f32 %v2126_v22, %v2098_v16 }
0x10f1   : > { %3011 = vrcp.f32 %v2102_v20  ;;  %v2103_v23 = vadd.f32 1.0, %v2101_v21  ;;  %v2129_v33 = vmul.f32 %v2127_v25, %v2099_v19  ;;  %v2130_v37 = vmul.f32 1.442695, %v2128_v27 }
0x10f3   : > { %3013 = vrcp.f32 %v2103_v23  ;;  %v2132_v41 = vmul.f32 1.442695, %v2129_v33 }
0x10f4   : > { %3015 = vpow2.f32 %v2130_v37 }
0x10f5   : > { %3017 = vpow2.f32 %v2132_v41 }
0x10fb   : > { %v3012_v26 = vpop.eup %3011 }
0x10fc   : > { %v2108_v30 = vmul.f32 1.0614054, %v3012_v26 }
0x10fd   : > { %v3014_v31 = vpop.eup %3013 }
0x10fe   : > { %v2110_v32 = vadd.f32 -1.4531521, %v2108_v30  ;;  %v2109_v35 = vmul.f32 1.0614054, %v3014_v31  ;;  %v3016_v51 = vpop.eup %3015 }
0x10ff   : > { %v3018_v29 = vpop.eup %3017 }
0x1100   : > { %v2112_v36 = vmul.f32 %v3012_v26, %v2110_v32  ;;  %v2111_v38 = vadd.f32 -1.4531521, %v2109_v35 }
0x1102   : > { %v2114_v40 = vadd.f32 1.4214138, %v2112_v36  ;;  %v2113_v42 = vmul.f32 %v3014_v31, %v2111_v38 }
0x1104   : > { %v2116_v54 = vmul.f32 %v3012_v26, %v2114_v40  ;;  %v2115_v43 = vadd.f32 1.4214138, %v2113_v42 }
0x1106   : > { %v2118_v7 = vadd.f32 -0.28449672, %v2116_v54  ;;  %v2117_v44 = vmul.f32 %v3014_v31, %v2115_v43 }
0x1108   : > { %v2120_v45 = vmul.f32 %v3012_v26, %v2118_v7  ;;  %v2119_v8 = vadd.f32 -0.28449672, %v2117_v44 }
0x110a   : > { %v2122_v47 = vadd.f32 0.2548296, %v2120_v45  ;;  %v2121_v48 = vmul.f32 %v3014_v31, %v2119_v8 }
0x110c   : > { %v2124_v50 = vmul.f32 %v3012_v26, %v2122_v47  ;;  %v2123_v49 = vadd.f32 0.2548296, %v2121_v48 }
0x110e   : > { %v2134_v24 = vmul.f32 %v3016_v51, %v2124_v50  ;;  %v2125_v28 = vmul.f32 %v3014_v31, %v2123_v49 }
0x1110   : > { %v2136_v52 = vsub.f32 1.0, %v2134_v24  ;;  %v2135_v53 = vmul.f32 %v3018_v29, %v2125_v28 }
0x1112   : > { %v2140_v55 = vsub.f32 0.0, %v2136_v52  ;;  %v2137_v56 = vsub.f32 1.0, %v2135_v53 }
0x1114   : > { %v2142_v57 = vsel %vm2138_vm9, %v2140_v55, %v2136_v52  ;;  %v2141_v58 = vsub.f32 0.0, %v2137_v56 }
0x1115   : > { %v2146_v59 = vadd.f32 1.0, %v2142_v57 }
0x1116   : > { %v2143_v60 = vsel %vm2139_vm10, %v2141_v58, %v2137_v56 }
0x1117   : > { %v2147_v62 = vadd.f32 1.0, %v2143_v60  ;;  %v2148_v63 = vmul.f32 %v2146_v59, %v2144_v61 }
0x1119   : > { %v2149_v0 = vmul.f32 %v2147_v62, %v2145_v46 }
0x111b   : > { %v2150_v1 = vpack.c.bf16 %v2149_v0, %v2148_v63 }
0x111d   : > { %2793 = vmatmul.mubr.msk.bf16.vlgmr.msra.gmra.mrb[36].mxu1 %vm2190_vm11, %v2150_v1 }
0x11f0   : > { %v2228_v3 = vpop.f32.mrb[36].mxu1 }
0x11f1   : > { %v2229_v4 = vadd.f32 %v2602_v2, %v2228_v3  ;;  %v2794_v5 = vpop.f32.mrb[37].mxu1 }
0x11f2   : > { %v2231_v6 = vpop.f32.mrb[38].mxu1 }
0x11f3   : > { %v2235_v9 = vadd.f32 %v2229_v4, %v4354_v34  ;;  %v2232_v10 = vadd.f32 %v2602_v2, %v2231_v6  ;;  %v2795_v11 = vpop.f32.mrb[39].mxu1 }
0x11f5   : > { %2237 = vst.msk [vmem:[#allocation24] sm:$0xff] %vm885_vm3, %v2235_v9  ;;  %v2236_v12 = vadd.f32 %v2232_v10, %v4357_v39 }
0x11f7   : > { %2238 = vst.msk [vmem:[#allocation24 + $0x8] sm:$0xff] %vm885_vm3, %v2236_v12 }
0x11f8   : > { %3420 = shalt.err (!%p3417_p6)
}
0x11f9   : > { %s4519_s17 = sld [smem:[#allocation45_spill]] }
0x11ff   : > { %s3421_s5 = scalar_lea.hbm %s4519_s17, 256 }
0x1200   : > { %p3422_p11 = scmp.ne.s32.totalorder %s4519_s17, %s3421_s5  ;;  %p3427_p9 = scmp.lt.u32.totalorder %s3421_s5, %s4519_s17 }
0x1202   : > { %p3423_p3 = pnand %p3422_p11, %p2872_p2 }
0x1204   : > { %p3424_p0 = pneg %p3423_p3 }
0x1206   : > { %p3429_p12 = pnand %p3427_p9, %p3424_p0 }
0x1208   : > { %3432 = shalt.err (!%p3429_p12)
}
0x1209   : > { %s3548_s16 = smov 128  }
0x120a   : > { %2825 = dma.vmem_to_hbm [thread:$0]  (%p2872_p2), %s2249_s13, 256, %s4519_s17, [#allocation5], %s3548_s16, %s3548_s16, %s3544_s21  }
0x120b   : > { %3486 = dma.done.wait (%p2872_p2), [#allocation5], 256  }
0x120c   : > { %3488 = vsyncadd (%p2872_p2), [#allocation5], 4294967040 }
0x120d PF: > { %s43_s30 = sadd.s32 1, %s3511_s30   ;;  %s4520_s20 = sld [smem:[#allocation33_spill]] }
0x120e   : > { %p40_p7 = scmp.ge.s32.totalorder %s43_s30, 4   ;;  %s4521_s27 = sld [smem:[#allocation36_spill]] }
0x120f   : > { %s4522_s8 = sld [smem:[#allocation35_spill]]  ;;  %s4523_s25 = smov %s3495_s26 }
0x1210   : > { %s4525_s28 = smov %s3507_s29  ;;  %42 = sbr.rel (!%p40_p7) target bundleno = 26 (0x1a), region = 251 }
0x1213   : > { %s4524_s26 = smov %s4520_s20 }
0x1215   : > { %s4526_s29 = smov %s4522_s8 }
0x1217   :  { %2264 = vsyncpa [#allocation4], 1 }
0x1218   :  { %2266 = vsyncpa [#allocation4 + $0x1], 1 }
0x1219   :  { %2267 = vsyncpa [#allocation7], 1 }
0x121a   :  { %2269 = vsyncpa [#allocation7 + $0x1], 1 }
0x121b   :  { %2270 = vsyncpa [#allocation10], 1 }
0x121c   :  { %2272 = vsyncpa [#allocation10 + $0x1], 1 }
0x121d   :  { %2273 = vsyncpa [#allocation13], 1 }
0x121e   :  { %2275 = vsyncpa [#allocation13 + $0x1], 1 }
0x121f   :  { %2276 = vsyncpa [#allocation16], 1 }
0x1220   :  { %2278 = vsyncpa [#allocation16 + $0x1], 1 }
0x1221   :  { %2279 = vsyncpa [#allocation19], 1 }
0x1222   :  { %2281 = vsyncpa [#allocation19 + $0x1], 1 }
0x1223   :  { %2282 = vsyncpa [#allocation22], 1 }
0x1224   :  { %2284 = vsyncpa [#allocation22 + $0x1], 1 }
0x1225   :  { %2285 = vsyncpa [#allocation5], 1 }
0x1226   :  { %2287 = vsyncpa [#allocation5 + $0x1], 1 }

</bundles_post_ra>
